<compile_context>
chip_gen: v7x
topology: tpu7x:2x2x1
jax: 0.10.0
libtpu: 0.0.40
codegen_flags: <defaults>
</compile_context>

<pallas_src>
import jax
import jax.numpy as jnp
import numpy as np
from jax.experimental import pallas as pl
from jax.experimental.pallas import tpu as pltpu


def net_kernel(adj_ref, feat_ref,
               w1_ref, b1_ref, w2_ref, b2_ref, w3_ref, b3_ref,
               out_ref):
    GBN = adj_ref.shape[0]                  # GB * NPG rows in this graph block
    GB = out_ref.shape[0]                   # graphs per block
    NPG = GBN // GB                         # nodes per graph
    HID = w1_ref.shape[-1]                  # hidden width (lane-padded to 128)

    adj = adj_ref[...]                      # (GBN, GBN) bf16 block-diag (exact 0/1)

    # --- GCNLayer 1: neighbor sum + shared Linear + ReLU (two MXU dots) ---
    agg1 = jnp.dot(adj, feat_ref[...], preferred_element_type=jnp.float32)
    # Neighbor sums of one-hot features are small integers -> exact in bf16.
    x1 = jnp.dot(agg1.astype(jnp.bfloat16), w1_ref[...],
                 preferred_element_type=jnp.float32) + b1_ref[...]
    x1 = jnp.maximum(x1, 0.0)               # (GBN, HID) f32

    # --- GCNLayer 2 ---
    # NOTE: x1 (f32 ReLU activations) is cast to bf16 for the MXU; this and the
    # agg2 cast are the only inexact steps and are covered by the test tolerance.
    agg2 = jnp.dot(adj, x1.astype(jnp.bfloat16),
                   preferred_element_type=jnp.float32)
    x2 = jnp.dot(agg2.astype(jnp.bfloat16), w2_ref[...],
                 preferred_element_type=jnp.float32) + b2_ref[...]
    x2 = jnp.maximum(x2, 0.0)               # (GBN, HID) f32

    # --- SumPooling over the NPG nodes of each graph (f32, exact) ---
    # (GBN, HID) -> (GB, NPG, HID): split lands on f32 (8,128) tile boundaries.
    pooled = jnp.sum(x2.reshape(GB, NPG, HID), axis=1)       # (GB, HID) f32

    # --- Final Linear (output dim pre-padded to 128 lanes) + ReLU ---
    out = jnp.dot(pooled.astype(jnp.bfloat16), w3_ref[...],
                  preferred_element_type=jnp.float32) + b3_ref[...]
    out_ref[...] = jnp.maximum(out, 0.0)    # (GB, OUT_PAD) f32, dense vst


def _pad2d(x, rows, cols, dtype):
    out = jnp.zeros((rows, cols), dtype)
    return out.at[:x.shape[0], :x.shape[1]].set(x.astype(dtype))


def net_forward(adj, feat, w1, b1, w2, b2, w3, b3, *, graphs_per_block=32):
    """adj: (B, NPG, NPG) 0/1 per-graph adjacency, feat: (B, NPG, IN_F)."""
    B, NPG, _ = adj.shape
    IN_F = feat.shape[-1]
    HID = w1.shape[-1]
    OUT_F = w3.shape[-1]
    GB = graphs_per_block
    assert B % GB == 0, "batch of graphs must be divisible by graphs_per_block"
    NB = B // GB
    GBN = GB * NPG

    def rup128(x):
        return max(128, ((x + 127) // 128) * 128)

    IN_PAD, HID_PAD, OUT_PAD = rup128(IN_F), rup128(HID), rup128(OUT_F)

    # Block-diagonal adjacency per graph block, flattened to 2-D (NB*GBN, GBN):
    # row = n*GBN + g*NPG + i, col = h*NPG + j, nonzero only when g == h.
    adj4 = adj.reshape(NB, GB, NPG, NPG)
    eye = jnp.eye(GB, dtype=adj.dtype)
    adj_bd = jnp.einsum('ngij,gh->ngihj', adj4, eye).reshape(NB * GBN, GBN)
    adj_bd = adj_bd.astype(jnp.bfloat16)                       # exact 0/1

    # Features flattened to 2-D and lane-padded (zeros are exact through the net).
    feat2d = _pad2d(feat.reshape(B * NPG, IN_F), B * NPG, IN_PAD, jnp.bfloat16)

    # Weights/biases zero-padded to full 128-lane tiles (padded rows/cols stay
    # zero through bias=0 + ReLU and zero rows of W2/W3 -> result unchanged).
    w1_p = _pad2d(w1, IN_PAD, HID_PAD, jnp.bfloat16)
    w2_p = _pad2d(w2, HID_PAD, HID_PAD, jnp.bfloat16)
    w3_p = _pad2d(w3, HID_PAD, OUT_PAD, jnp.bfloat16)
    b1_p = _pad2d(b1, 1, HID_PAD, jnp.float32)
    b2_p = _pad2d(b2, 1, HID_PAD, jnp.float32)
    b3_p = _pad2d(b3, 1, OUT_PAD, jnp.float32)

    def resident(shape):                     # weights: same block every step
        return pl.BlockSpec(shape, lambda g: (0, 0))

    out_padded = pl.pallas_call(
        net_kernel,
        out_shape=jax.ShapeDtypeStruct((B, OUT_PAD), jnp.float32),
        grid_spec=pltpu.PrefetchScalarGridSpec(
            num_scalar_prefetch=0,
            grid=(NB,),
            in_specs=[
                pl.BlockSpec((GBN, GBN), lambda g: (g, 0)),      # block-diag adj
                pl.BlockSpec((GBN, IN_PAD), lambda g: (g, 0)),   # features
                resident((IN_PAD, HID_PAD)),                     # w1
                resident((1, HID_PAD)),                          # b1
                resident((HID_PAD, HID_PAD)),                    # w2
                resident((1, HID_PAD)),                          # b2
                resident((HID_PAD, OUT_PAD)),                    # w3
                resident((1, OUT_PAD)),                          # b3
            ],
            out_specs=pl.BlockSpec((GB, OUT_PAD), lambda g: (g, 0)),
        ),
        compiler_params=pltpu.CompilerParams(
            dimension_semantics=("parallel",)),  # one 256-row block per TC on v7x
    )(adj_bd, feat2d, w1_p, b1_p, w2_p, b2_p, w3_p, b3_p)

    return out_padded[:, :OUT_F]


def reference_forward(adj, feat, w1, b1, w2, b2, w3, b3):
    """Pure-JAX f32 reference with identical semantics."""
    agg1 = jnp.einsum('gij,gjf->gif', adj, feat)
    x1 = jax.nn.relu(agg1 @ w1 + b1)
    agg2 = jnp.einsum('gij,gjf->gif', adj, x1)
    x2 = jax.nn.relu(agg2 @ w2 + b2)
    pooled = x2.sum(axis=1)                      # SumPooling over nodes
    return jax.nn.relu(pooled @ w3 + b3)


def make_linear_params(key, fan_in, fan_out):
    # Mimics nn.Linear's U(-1/sqrt(fan_in), 1/sqrt(fan_in)); weight stored [in, out].
    kw, kb = jax.random.split(key)
    bound = 1.0 / np.sqrt(fan_in)
    w = jax.random.uniform(kw, (fan_in, fan_out), jnp.float32, -bound, bound)
    b = jax.random.uniform(kb, (1, fan_out), jnp.float32, -bound, bound)
    return w, b


if __name__ == "__main__":
    key = jax.random.PRNGKey(0)

    # 64 graphs of 8 nodes each, input_features=8, hidden=32, output=16.
    B = 64
    NPG = 8
    IN_F, HID, OUT_F = 8, 32, 16

    k_adj, k_feat, k1, k2, k3 = jax.random.split(key, 5)

    # Per-graph random adjacency (edges only within each graph; the block-diag
    # structure is exploited per 32-graph block without building a full NxN matrix).
    adj = jax.random.bernoulli(k_adj, 0.4, (B, NPG, NPG)).astype(jnp.float32)

    # Node features ("mol_ohe"): random one-hot per node.
    ohe_idx = jax.random.randint(k_feat, (B, NPG), 0, IN_F)
    feat = jax.nn.one_hot(ohe_idx, IN_F, dtype=jnp.float32)

    # Parameters for the three Linear layers.
    w1, b1 = make_linear_params(k1, IN_F, HID)
    w2, b2 = make_linear_params(k2, HID, HID)
    w3, b3 = make_linear_params(k3, HID, OUT_F)

    out = net_forward(adj, feat, w1, b1, w2, b2, w3, b3, graphs_per_block=32)
    out = jax.block_until_ready(out)

    ref = reference_forward(adj, feat, w1, b1, w2, b2, w3, b3)
    # Tolerance loosened vs. the f32 reference because weights and the layer-2
    # activations are fed to the MXU in bf16 (adjacency / one-hot / integer
    # neighbor-count casts are exact).
    np.testing.assert_allclose(np.asarray(out), np.asarray(ref), rtol=5e-2, atol=5e-2)

    print("KERNEL_OK")
</pallas_src>

<mosaic_0001>
module attributes {stable_mosaic.version = 11 : i64} {
  func.func @net_kernel(%arg0: i32, %arg1: memref<256x256xbf16, #tpu.memory_space<vmem>>, %arg2: memref<256x128xbf16, #tpu.memory_space<vmem>>, %arg3: memref<128x128xbf16, #tpu.memory_space<vmem>>, %arg4: memref<1x128xf32, #tpu.memory_space<vmem>>, %arg5: memref<128x128xbf16, #tpu.memory_space<vmem>>, %arg6: memref<1x128xf32, #tpu.memory_space<vmem>>, %arg7: memref<128x128xbf16, #tpu.memory_space<vmem>>, %arg8: memref<1x128xf32, #tpu.memory_space<vmem>>, %arg9: memref<32x128xf32, #tpu.memory_space<vmem>>) attributes {dimension_semantics = [#tpu.dimension_semantics<parallel>], iteration_bounds = array<i64: 2>, scalar_prefetch = 0 : i64, scratch_operands = 0 : i64, tpu.core_type = #tpu.core_type<tc>, window_params = [{transform_indices = @transform_0, window_bounds = array<i64: 256, 256>}, {transform_indices = @transform_1, window_bounds = array<i64: 256, 128>}, {pipeline_mode = #tpu.pipeline_mode<synchronous>, transform_indices = @transform_2, window_bounds = array<i64: 128, 128>}, {pipeline_mode = #tpu.pipeline_mode<synchronous>, transform_indices = @transform_3, window_bounds = array<i64: 1, 128>}, {pipeline_mode = #tpu.pipeline_mode<synchronous>, transform_indices = @transform_4, window_bounds = array<i64: 128, 128>}, {pipeline_mode = #tpu.pipeline_mode<synchronous>, transform_indices = @transform_5, window_bounds = array<i64: 1, 128>}, {pipeline_mode = #tpu.pipeline_mode<synchronous>, transform_indices = @transform_6, window_bounds = array<i64: 128, 128>}, {pipeline_mode = #tpu.pipeline_mode<synchronous>, transform_indices = @transform_7, window_bounds = array<i64: 1, 128>}, {transform_indices = @transform_8, window_bounds = array<i64: 32, 128>}]} {
    %c0 = arith.constant 0 : index
    %c0_0 = arith.constant 0 : index
    %0 = vector.load %arg1[%c0, %c0_0] : memref<256x256xbf16, #tpu.memory_space<vmem>>, vector<256x256xbf16>
    %c0_1 = arith.constant 0 : index
    %c0_2 = arith.constant 0 : index
    %1 = vector.load %arg2[%c0_1, %c0_2] : memref<256x128xbf16, #tpu.memory_space<vmem>>, vector<256x128xbf16>
    %cst = arith.constant dense<0.000000e+00> : vector<256x128xf32>
    %2 = tpu.matmul %0, %1, %cst {dimension_numbers = #tpu.dot_dimension_numbers<[1], [0], [0], [1], [0, 0, 1, 1], [], []>} : vector<256x256xbf16>, vector<256x128xbf16>, vector<256x128xf32> -> vector<256x128xf32>
    %3 = arith.truncf %2 : vector<256x128xf32> to vector<256x128xbf16>
    %c0_3 = arith.constant 0 : index
    %c0_4 = arith.constant 0 : index
    %4 = vector.load %arg3[%c0_3, %c0_4] : memref<128x128xbf16, #tpu.memory_space<vmem>>, vector<128x128xbf16>
    %cst_5 = arith.constant dense<0.000000e+00> : vector<256x128xf32>
    %5 = tpu.matmul %3, %4, %cst_5 {dimension_numbers = #tpu.dot_dimension_numbers<[1], [0], [0], [1], [0, 0, 1, 1], [], []>} : vector<256x128xbf16>, vector<128x128xbf16>, vector<256x128xf32> -> vector<256x128xf32>
    %c0_6 = arith.constant 0 : index
    %c0_7 = arith.constant 0 : index
    %6 = vector.load %arg4[%c0_6, %c0_7] : memref<1x128xf32, #tpu.memory_space<vmem>>, vector<1x128xf32>
    %7 = vector.broadcast %6 : vector<1x128xf32> to vector<256x128xf32>
    %8 = arith.addf %5, %7 : vector<256x128xf32>
    %cst_8 = arith.constant 0.000000e+00 : f32
    %9 = vector.broadcast %cst_8 : f32 to vector<256x128xf32>
    %10 = arith.maximumf %8, %9 : vector<256x128xf32>
    %11 = arith.truncf %10 : vector<256x128xf32> to vector<256x128xbf16>
    %cst_9 = arith.constant dense<0.000000e+00> : vector<256x128xf32>
    %12 = tpu.matmul %0, %11, %cst_9 {dimension_numbers = #tpu.dot_dimension_numbers<[1], [0], [0], [1], [0, 0, 1, 1], [], []>} : vector<256x256xbf16>, vector<256x128xbf16>, vector<256x128xf32> -> vector<256x128xf32>
    %13 = arith.truncf %12 : vector<256x128xf32> to vector<256x128xbf16>
    %c0_10 = arith.constant 0 : index
    %c0_11 = arith.constant 0 : index
    %14 = vector.load %arg5[%c0_10, %c0_11] : memref<128x128xbf16, #tpu.memory_space<vmem>>, vector<128x128xbf16>
    %cst_12 = arith.constant dense<0.000000e+00> : vector<256x128xf32>
    %15 = tpu.matmul %13, %14, %cst_12 {dimension_numbers = #tpu.dot_dimension_numbers<[1], [0], [0], [1], [0, 0, 1, 1], [], []>} : vector<256x128xbf16>, vector<128x128xbf16>, vector<256x128xf32> -> vector<256x128xf32>
    %c0_13 = arith.constant 0 : index
    %c0_14 = arith.constant 0 : index
    %16 = vector.load %arg6[%c0_13, %c0_14] : memref<1x128xf32, #tpu.memory_space<vmem>>, vector<1x128xf32>
    %17 = vector.broadcast %16 : vector<1x128xf32> to vector<256x128xf32>
    %18 = arith.addf %15, %17 : vector<256x128xf32>
    %cst_15 = arith.constant 0.000000e+00 : f32
    %19 = vector.broadcast %cst_15 : f32 to vector<256x128xf32>
    %20 = arith.maximumf %18, %19 : vector<256x128xf32>
    %21 = vector.shape_cast %20 : vector<256x128xf32> to vector<32x8x128xf32>
    %cst_16 = arith.constant dense<0.000000e+00> : vector<32x128xf32>
    %22 = vector.multi_reduction <add>, %21, %cst_16 [1] : vector<32x8x128xf32> to vector<32x128xf32>
    %23 = arith.truncf %22 : vector<32x128xf32> to vector<32x128xbf16>
    %c0_17 = arith.constant 0 : index
    %c0_18 = arith.constant 0 : index
    %24 = vector.load %arg7[%c0_17, %c0_18] : memref<128x128xbf16, #tpu.memory_space<vmem>>, vector<128x128xbf16>
    %cst_19 = arith.constant dense<0.000000e+00> : vector<32x128xf32>
    %25 = tpu.matmul %23, %24, %cst_19 {dimension_numbers = #tpu.dot_dimension_numbers<[1], [0], [0], [1], [0, 0, 1, 1], [], []>} : vector<32x128xbf16>, vector<128x128xbf16>, vector<32x128xf32> -> vector<32x128xf32>
    %c0_20 = arith.constant 0 : index
    %c0_21 = arith.constant 0 : index
    %26 = vector.load %arg8[%c0_20, %c0_21] : memref<1x128xf32, #tpu.memory_space<vmem>>, vector<1x128xf32>
    %27 = vector.broadcast %26 : vector<1x128xf32> to vector<32x128xf32>
    %28 = arith.addf %25, %27 : vector<32x128xf32>
    %cst_22 = arith.constant 0.000000e+00 : f32
    %29 = vector.broadcast %cst_22 : f32 to vector<32x128xf32>
    %30 = arith.maximumf %28, %29 : vector<32x128xf32>
    %c0_23 = arith.constant 0 : index
    %c0_24 = arith.constant 0 : index
    %31 = vector.load %arg9[%c0_23, %c0_24] : memref<32x128xf32, #tpu.memory_space<vmem>>, vector<32x128xf32>
    tpu.vector_store %arg9[%c0_23, %c0_24], %30 {strides = array<i32>} : memref<32x128xf32, #tpu.memory_space<vmem>>, vector<32x128xf32>,
    return
  }
  func.func @transform_0(%arg0: i32) -> (i32, i32) {
    %c0_i32 = arith.constant 0 : i32
    %c0_i32_0 = arith.constant 0 : i32
    return %arg0, %c0_i32 : i32, i32
  }
  func.func @transform_1(%arg0: i32) -> (i32, i32) {
    %c0_i32 = arith.constant 0 : i32
    %c0_i32_0 = arith.constant 0 : i32
    return %arg0, %c0_i32 : i32, i32
  }
  func.func @transform_2(%arg0: i32) -> (i32, i32) {
    %c0_i32 = arith.constant 0 : i32
    %c0_i32_0 = arith.constant 0 : i32
    %c0_i32_1 = arith.constant 0 : i32
    return %c0_i32, %c0_i32_0 : i32, i32
  }
  func.func @transform_3(%arg0: i32) -> (i32, i32) {
    %c0_i32 = arith.constant 0 : i32
    %c0_i32_0 = arith.constant 0 : i32
    %c0_i32_1 = arith.constant 0 : i32
    return %c0_i32, %c0_i32_0 : i32, i32
  }
  func.func @transform_4(%arg0: i32) -> (i32, i32) {
    %c0_i32 = arith.constant 0 : i32
    %c0_i32_0 = arith.constant 0 : i32
    %c0_i32_1 = arith.constant 0 : i32
    return %c0_i32, %c0_i32_0 : i32, i32
  }
  func.func @transform_5(%arg0: i32) -> (i32, i32) {
    %c0_i32 = arith.constant 0 : i32
    %c0_i32_0 = arith.constant 0 : i32
    %c0_i32_1 = arith.constant 0 : i32
    return %c0_i32, %c0_i32_0 : i32, i32
  }
  func.func @transform_6(%arg0: i32) -> (i32, i32) {
    %c0_i32 = arith.constant 0 : i32
    %c0_i32_0 = arith.constant 0 : i32
    %c0_i32_1 = arith.constant 0 : i32
    return %c0_i32, %c0_i32_0 : i32, i32
  }
  func.func @transform_7(%arg0: i32) -> (i32, i32) {
    %c0_i32 = arith.constant 0 : i32
    %c0_i32_0 = arith.constant 0 : i32
    %c0_i32_1 = arith.constant 0 : i32
    return %c0_i32, %c0_i32_0 : i32, i32
  }
  func.func @transform_8(%arg0: i32) -> (i32, i32) {
    %c0_i32 = arith.constant 0 : i32
    %c0_i32_0 = arith.constant 0 : i32
    return %arg0, %c0_i32 : i32, i32
  }
}

</mosaic_0001>

<bundles_post_ra>
// kernel: tpu_custom_call.1
= control target key start
LH: loop header
LB: loop body
LE: loop exit
PB: predicated region body
PF: predicated region fallthrough
CT: control target
= control target key end

     0   :  { %s3805_s0 = inlined_call_operand.hbm [shape: bf16[512,256], index: 0, kind: input, shape index: {}]   ;;  %s3806_s1 = inlined_call_operand.hbm [shape: bf16[512,128], index: 1, kind: input, shape index: {}]   ;;  %s3807_s2 = inlined_call_operand.hbm [shape: bf16[128,128], index: 2, kind: input, shape index: {}]   ;;  %s3808_s3 = inlined_call_operand.vmem [shape: f32[1,128], index: 3, kind: input, shape index: {}]   ;;  %s3809_s4 = inlined_call_operand.hbm [shape: bf16[128,128], index: 4, kind: input, shape index: {}]   ;;  %s3810_s5 = inlined_call_operand.vmem [shape: f32[1,128], index: 5, kind: input, shape index: {}]   ;;  %s3811_s6 = inlined_call_operand.hbm [shape: bf16[128,128], index: 6, kind: input, shape index: {}]   ;;  %s3812_s7 = inlined_call_operand.vmem [shape: f32[1,128], index: 7, kind: input, shape index: {}]   ;;  %s3813_s8 = inlined_call_operand.hbm [shape: f32[64,128], index: 8, kind: output, shape index: {}]  }
   0x1   :  { %3821 = sst [smem:[#allocation19_spill]] %s3805_s0 }
   0x2   :  { %3822 = sst [smem:[#allocation20_spill]] %s3807_s2 }
   0x3   :  { %3823 = sst [smem:[#allocation21_spill]] %s3809_s4 }
   0x4   :  { %3824 = sst [smem:[#allocation22_spill]] %s3811_s6 }
   0x5   :  { %13 = vsyncpa [#allocation3], 0 }
   0x6   :  { %15 = vsyncpa [#allocation3 + $0x1], 0 }
   0x7   :  { %16 = vsyncpa [#allocation6], 0 }
   0x8   :  { %18 = vsyncpa [#allocation6 + $0x1], 0 }
   0x9   :  { %19 = vsyncpa [#allocation9], 0 }
   0xa   :  { %20 = vsyncpa [#allocation4], 0 }
   0xb   :  { %22 = vsyncpa [#allocation4 + $0x1], 0  ;;  %s3182_s27 = smov 0   ;;  %s3184_s28 = smov 0  }
   0xc   :  { %s3186_s29 = smov 0   ;;  %s3188_s30 = smov 0  }
   0xd LB: > { %3825 = sst [smem:[#allocation17_spill]] %s3111_s27  ;;  %s3203_s9 = sadd.s32 4294967295, %s3123_s30   ;;  %s3123_s30 = sphi %s3188_s30, %s3854_s30   ;;  %s3119_s29 = sphi %s3186_s29, %s3853_s29   ;;  %s3115_s28 = sphi %s3184_s28, %s3852_s28   ;;  %s3111_s27 = sphi %s3182_s27, %s3851_s27  }
   0xe   : > { %s2223_s10 = sadd.s32 4294967294, %s3123_s30   ;;  %p48_p0 = scmp.ne.s32.totalorder %s3115_s28, %s3111_s27 }
   0xf   : > { %p3814_p1 = scmp.eq.s32.totalorder %s3203_s9, 0  ;;  %p230_p3 = scmp.eq.s32.totalorder %s2223_s10, 1 }
  0x10   : > { %p2224_p5 = scmp.ge.s32.totalorder %s3123_s30, 1  ;;  %p237_p7 = scmp.lt.s32.totalorder %s3123_s30, 3 }
  0x11   : > { %p3212_p4 = por %p3814_p1, %p48_p0  ;;  %p3217_p6 = por %p230_p3, %p48_p0 }
  0x12   : > { %p3222_p8 = pnand %p2224_p5, %p237_p7  ;;  %s3125_s14 = smov [#allocation7]  }
  0x13   : > { %s3826_s11 = scalar_select %p3212_p4, 1, 0 }
  0x14   : > { %s3827_s12 = scalar_select %p3217_p6, 1, 0 }
  0x15   : > { %s3829_s13 = scalar_select %p3222_p8, 1, 0 }
  0x16   : > { %3828 = sst [smem:[#allocation18_spill]] %s3827_s12  ;;  %s249_s15 = sshll.u32 %s3125_s14, 4  ;;  %s3226_s15 = int_to_ptr.vmem [resolvable:$true] %s249_s15 }
  0x17   : > { %p2743_p9 = pneg %p3222_p8  ;;  %s3126_s17 = smov [#allocation8]  }
  0x18   : > { %s265_s18 = sshll.u32 %s3126_s17, 4  ;;  %s3127_s19 = smov [#allocation10]   ;;  %s3237_s18 = int_to_ptr.vmem [resolvable:$true] %s265_s18 }
  0x19   : > { %p3233_p11 = pnand %p2743_p9, %p3814_p1  ;;  %s3239_s20 = sshll.u32 %s3127_s19, 4  ;;  %s282_s20 = int_to_ptr.vmem [resolvable:$true] %s3239_s20 }
  0x1a   : > { %s3831_s2 = sld [smem:[#allocation20_spill]] }
  0x1b   : > { %p3249_p13 = pneg %p3233_p11 }
  0x20   : > { %s2901_s23 = scalar_lea.hbm %s3831_s2, 1024 }
  0x21   : > { %p2902_p12 = scmp.ne.s32.totalorder %s3831_s2, %s2901_s23  ;;  %p2908_p5 = scmp.lt.u32.totalorder %s2901_s23, %s3831_s2 }
  0x23   : > { %p2904_p0 = pnand %p3249_p13, %p2902_p12 }
  0x25   : > { %p2905_p3 = pneg %p2904_p0 }
  0x27   : > { %p2910_p7 = pnand %p2908_p5, %p2905_p3 }
  0x29   : > { %2913 = shalt.err (!%p2910_p7)
}
  0x2a   : > { %s2914_s17 = scalar_lea.vmem %s3226_s15, 1024  ;;  %p2922_p2 = scmp.lt.s32.totalorder %s3226_s15, %s3226_s15 }
  0x2b   : > { %p2915_p9 = scmp.ne.s32.totalorder %s3226_s15, %s2914_s17  ;;  %p2923_p6 = scmp.lt.s32.totalorder %s2914_s17, %s2914_s17 }
  0x2d   : > { %p2917_p10 = pnand %p2915_p9, %p3249_p13  ;;  %p2924_p12 = por %p2923_p6, %p2922_p2 }
  0x2f   : > { %p2918_p1 = pneg %p2917_p10 }
  0x31   : > { %p2925_p0 = pnand %p2924_p12, %p2918_p1 }
  0x33   : > { %2928 = shalt.err (!%p2925_p0)
}
  0x34   : > { %s3819_s19 = smov 64   ;;  %s3820_s21 = smov 4  }
  0x35   : > { %2746 = dma.hbm_to_vmem [thread:$0]  (!%p3233_p11), %s3831_s2, 1024, %s3226_s15, [#allocation6], %s3819_s19, %s3819_s19, %s3820_s21  }
  0x36   : > { %s3833_s4 = sld [smem:[#allocation21_spill]] }
  0x3c   : > { %s2929_s10 = scalar_lea.hbm %s3833_s4, 1024 }
  0x3d   : > { %p2930_p1 = scmp.ne.s32.totalorder %s3833_s4, %s2929_s10  ;;  %p2936_p10 = scmp.lt.u32.totalorder %s2929_s10, %s3833_s4 }
  0x3f   : > { %p2932_p2 = pnand %p2930_p1, %p3249_p13 }
  0x41   : > { %p2933_p6 = pneg %p2932_p2 }
  0x43   : > { %p2938_p3 = pnand %p2936_p10, %p2933_p6 }
  0x45   : > { %2941 = shalt.err (!%p2938_p3)
}
  0x46   : > { %s2942_s15 = scalar_lea.vmem %s3237_s18, 1024  ;;  %p2950_p12 = scmp.lt.s32.totalorder %s3237_s18, %s3237_s18 }
  0x47   : > { %p2943_p5 = scmp.ne.s32.totalorder %s3237_s18, %s2942_s15  ;;  %p2951_p0 = scmp.lt.s32.totalorder %s2942_s15, %s2942_s15 }
  0x49   : > { %p2945_p7 = pnand %p2943_p5, %p3249_p13  ;;  %p2952_p1 = por %p2951_p0, %p2950_p12 }
  0x4b   : > { %p2946_p9 = pneg %p2945_p7 }
  0x4d   : > { %p2953_p2 = pnand %p2952_p1, %p2946_p9 }
  0x4f   : > { %2956 = shalt.err (!%p2953_p2)
}
  0x50   : > { %2749 = dma.hbm_to_vmem [thread:$0]  (!%p3233_p11), %s3833_s4, 1024, %s3237_s18, [#allocation9], %s3819_s19, %s3819_s19, %s3820_s21  }
  0x51   : > { %s3834_s6 = sld [smem:[#allocation22_spill]] }
  0x57   : > { %s2957_s24 = scalar_lea.hbm %s3834_s6, 1024 }
  0x58   : > { %p2958_p6 = scmp.ne.s32.totalorder %s3834_s6, %s2957_s24  ;;  %p2964_p5 = scmp.lt.u32.totalorder %s2957_s24, %s3834_s6 }
  0x5a   : > { %p2960_p10 = pnand %p2958_p6, %p3249_p13 }
  0x5c   : > { %p2961_p3 = pneg %p2960_p10 }
  0x5e   : > { %p2966_p7 = pnand %p2964_p5, %p2961_p3 }
  0x60   : > { %2969 = shalt.err (!%p2966_p7)
}
  0x61   : > { %s2970_s15 = scalar_lea.vmem %s282_s20, 1024  ;;  %p2978_p1 = scmp.lt.s32.totalorder %s282_s20, %s282_s20 }
  0x62   : > { %p2971_p9 = scmp.ne.s32.totalorder %s282_s20, %s2970_s15  ;;  %p2979_p2 = scmp.lt.s32.totalorder %s2970_s15, %s2970_s15 }
  0x64   : > { %p2973_p12 = pnand %p2971_p9, %p3249_p13  ;;  %p2980_p4 = por %p2979_p2, %p2978_p1 }
  0x66   : > { %p2974_p0 = pneg %p2973_p12 }
  0x68   : > { %p2981_p8 = pnand %p2980_p4, %p2974_p0 }
  0x6a   : > { %2984 = shalt.err (!%p2981_p8)
}
  0x6b   : > { %2752 = dma.hbm_to_vmem [thread:$0]  (!%p3233_p11), %s3834_s6, 1024, %s282_s20, [#allocation9], %s3819_s19, %s3819_s19, %s3820_s21  }
  0x6c   : > { %s3322_s26 = sadd.s32 1, %s3123_s30   ;;  %s35_s12 = sadd.s32 1, %s3119_s29 }
  0x6d   : > { %s32_s16 = ssub.s32 %s3123_s30, %s3322_s26  ;;  %p42_p8 = scmp.ne.s32.totalorder %s3119_s29, %s3115_s28 }
  0x6e   : > { %p33_p4 = scmp.eq.s32.totalorder %s32_s16, 0  ;;  %p43_p13 = scmp.eq.s32.totalorder %s3123_s30, 0 }
  0x6f   : > { %p2767_p6 = scmp.lt.s32.totalorder %s3123_s30, 2  ;;  %p3835_p3 = scmp.eq.s32.totalorder %s3203_s9, 1 }
  0x70   : > { %s3332_s22 = scalar_select %p33_p4, %s3119_s29, %s35_s12  }
  0x71   : > { %p44_p10 = por %p43_p13, %p42_p8  ;;  %p3336_p5 = por %p3835_p3, %p42_p8 }
  0x72   : > { %s3341_s24 = sand.u32 1, %s3119_s29   ;;  %s2324_s20 = sshll.u32 %s3123_s30, 12 }
  0x73   : > { %s2229_s25 = sshll.u32 %s3341_s24, 8  ;;  %s3837_s0 = sld [smem:[#allocation19_spill]] }
  0x74   : > { %s302_s15 = scalar_lea.vmem [#allocation2], %s2229_s25  ;;  %p3350_p11 = pnand %p2767_p6, %p44_p10 }
  0x75   : > { %s310_s18 = sshll.u32 %s302_s15, 4  ;;  %s299_s16 = scalar_lea.sflag [#allocation3], %s3341_s24  ;;  %s3354_s18 = int_to_ptr.vmem [resolvable:$true] %s310_s18 }
  0x76   : > { %p2987_p9 = pneg %p3350_p11 }
  0x79   : > { %s3348_s17 = scalar_lea.hbm %s3837_s0, %s2324_s20  ;;  %s2990_s10 = scalar_lea.hbm %s3837_s0, 8192 }
  0x7a   : > { %s2985_s12 = scalar_lea.hbm %s3348_s17, 4096  ;;  %p2991_p1 = scmp.lt.u32.totalorder %s3348_s17, %s3837_s0 }
  0x7b   : > { %p2986_p7 = scmp.ne.s32.totalorder %s3348_s17, %s2985_s12  ;;  %p2992_p2 = scmp.lt.u32.totalorder %s2990_s10, %s2985_s12 }
  0x7c   : > { %p2994_p8 = scmp.lt.u32.totalorder %s2985_s12, %s3348_s17 }
  0x7d   : > { %p2988_p12 = pnand %p2987_p9, %p2986_p7  ;;  %p2993_p4 = por %p2992_p2, %p2991_p1 }
  0x7f   : > { %p2989_p0 = pneg %p2988_p12  ;;  %p2995_p13 = por %p2994_p8, %p2993_p4 }
  0x81   : > { %p2996_p6 = pnand %p2995_p13, %p2989_p0 }
  0x83   : > { %2999 = shalt.err (!%p2996_p6)
}
  0x84   : > { %s3000_s19 = scalar_lea.vmem %s3354_s18, 4096  ;;  %s3130_s20 = smov [#allocation2]  }
  0x85   : > { %p3001_p10 = scmp.ne.s32.totalorder %s3354_s18, %s3000_s19  ;;  %s3005_s25 = sshll.u32 %s3130_s20, 4  ;;  %s3006_s25 = int_to_ptr.vmem [resolvable:$false] %s3005_s25 }
  0x86   : > { %s3007_s14 = scalar_lea.vmem %s3006_s25, 8192  ;;  %p3008_p12 = scmp.lt.s32.totalorder %s3354_s18, %s3006_s25 }
  0x87   : > { %p3003_p3 = pnand %p3001_p10, %p2987_p9  ;;  %p3009_p1 = scmp.lt.s32.totalorder %s3007_s14, %s3000_s19 }
  0x89   : > { %p3004_p7 = pneg %p3003_p3  ;;  %p3010_p2 = por %p3009_p1, %p3008_p12 }
  0x8b   : > { %p3011_p4 = pnand %p3010_p2, %p3004_p7 }
  0x8d   : > { %3014 = shalt.err (!%p3011_p4)
}
  0x8e   : > { %s3131_s12 = smov 128   ;;  %s3132_s10 = smov 8  }
  0x8f   : > { %2756 = dma.hbm_to_vmem [thread:$0]  (!%p3350_p11), %s3348_s17, 4096, %s3354_s18, %s299_s16, %s3131_s12, %s3131_s12, %s3132_s10  }
  0x90   : > { %s320_s15 = sand.u32 1, %s3123_s30   ;;  %s2233_s20 = sshll.u32 %s3341_s24, 7 }
  0x91   : > { %s2325_s25 = sshll.u32 %s3123_s30, 11  ;;  %s324_s19 = scalar_lea.vmem [#allocation5], %s2233_s20 }
  0x92   : > { %s331_s14 = sshll.u32 %s324_s19, 4  ;;  %s3390_s2 = scalar_lea.hbm %s3806_s1, %s2325_s25  ;;  %s3392_s14 = int_to_ptr.vmem [resolvable:$true] %s331_s14 }
  0x93   : > { %s3394_s4 = scalar_lea.sflag [#allocation6], %s320_s15  ;;  %s3015_s6 = scalar_lea.hbm %s3390_s2, 2048 }
  0x94   : > { %p3016_p0 = scmp.ne.s32.totalorder %s3390_s2, %s3015_s6  ;;  %s3020_s0 = scalar_lea.hbm %s3806_s1, 4096 }
  0x95   : > { %p3021_p6 = scmp.lt.u32.totalorder %s3390_s2, %s3806_s1  ;;  %p3022_p10 = scmp.lt.u32.totalorder %s3020_s0, %s3015_s6 }
  0x96   : > { %p3018_p8 = pnand %p3016_p0, %p2987_p9  ;;  %p3024_p7 = scmp.lt.u32.totalorder %s3015_s6, %s3390_s2 }
  0x97   : > { %p3023_p3 = por %p3022_p10, %p3021_p6 }
  0x98   : > { %p3019_p13 = pneg %p3018_p8 }
  0x99   : > { %p3025_p12 = por %p3024_p7, %p3023_p3 }
  0x9b   : > { %p3026_p1 = pnand %p3025_p12, %p3019_p13 }
  0x9d   : > { %3029 = shalt.err (!%p3026_p1)
}
  0x9e   : > { %s3030_s16 = scalar_lea.vmem %s3392_s14, 2048  ;;  %s3133_s12 = smov [#allocation5]  }
  0x9f   : > { %p3031_p2 = scmp.ne.s32.totalorder %s3392_s14, %s3030_s16  ;;  %s3035_s10 = sshll.u32 %s3133_s12, 4  ;;  %s3036_s10 = int_to_ptr.vmem [resolvable:$false] %s3035_s10 }
  0xa0   : > { %s3037_s15 = scalar_lea.vmem %s3036_s10, 4096  ;;  %p3038_p8 = scmp.lt.s32.totalorder %s3392_s14, %s3036_s10 }
  0xa1   : > { %p3033_p4 = pnand %p3031_p2, %p2987_p9  ;;  %p3039_p6 = scmp.lt.s32.totalorder %s3037_s15, %s3030_s16 }
  0xa3   : > { %p3034_p0 = pneg %p3033_p4  ;;  %p3040_p10 = por %p3039_p6, %p3038_p8 }
  0xa5   : > { %p3041_p3 = pnand %p3040_p10, %p3034_p0 }
  0xa7   : > { %3044 = shalt.err (!%p3041_p3)
}
  0xa8   : > { %s3839_s6 = smov 4   ;;  %s3840_s20 = smov 64  }
  0xa9   : > { %2759 = dma.hbm_to_vmem [thread:$0]  (!%p3350_p11), %s3390_s2, 2048, %s3392_s14, %s3394_s4, %s3840_s20, %s3840_s20, %s3839_s6  }
  0xaa   : > { %p3841_p9 = scmp.ne.s32.totalorder %s3829_s13, 0 }
  0xab   : > { %s3426_s25 = sand.u32 (!%p3841_p9), 1, %s3115_s28   ;;  %p3842_p13 = scmp.ne.s32.totalorder (!%p3841_p9), %s3826_s11, 0 }
  0xac   : > { %343 = sbr.rel (%p3841_p9) target bundleno = 1604 (0x644), region = 52  ;;  %s2237_s19 = sshll.u32 (!%p3841_p9), %s3426_s25, 8 }
  0xad   : > { %s346_s24 = scalar_lea.sflag (!%p3841_p9), [#allocation3], %s3426_s25  ;;  %s3430_s17 = scalar_lea.vmem (!%p3841_p9), [#allocation2], %s2237_s19 }
  0xb3   : > { %3090 = dma.done.wait (%p3842_p13), %s346_s24, 4096  }
  0xb4   : > { %3092 = vsyncadd (%p3842_p13), %s346_s24, 4294963200  ;;  %s354_s2 = sand.u32 1, %s3203_s9   ;;  %s2238_s4 = sshll.u32 %s3426_s25, 7 }
  0xb5   : > { %s355_s13 = scalar_lea.sflag [#allocation6], %s354_s2  ;;  %s3438_s27 = scalar_lea.vmem [#allocation5], %s2238_s4 }
  0xb6   : > { %3094 = dma.done.wait (%p3842_p13), %s355_s13, 2048  }
  0xb7   : > { %3096 = vsyncadd (%p3842_p13), %s355_s13, 4294965248  ;;  %p3843_p11 = scmp.eq.s32.totalorder %s3203_s9, 0 }
  0xb9   : > { %3098 = dma.done.wait (%p3843_p11), [#allocation6], 1024   ;;  %p3844_p7 = pmov %p3843_p11 }
  0xbb   : > { %3100 = vsyncadd (%p3844_p7), [#allocation6], 4294966272  ;;  %p3845_p12 = pmov %p3844_p7 }
  0xbc   : > { %p3846_p1 = pmov %p3844_p7 }
  0xbd   : > { %3102 = dma.done.wait (%p3845_p12), [#allocation9], 2048  }
  0xbe   : > { %3104 = vsyncadd (%p3846_p1), [#allocation9], 4294965248  ;;  %v2813_v0 = vld [vmem:[%s3438_s27 + $0x40] sm:$0xff]   ;;  %v2815_v2 = vld [vmem:[%s3438_s27 + $0x48] sm:$0xff]   ;;  %vm1941_vm0 = vcmask 1041409   ;;  %vm1943_vm1 = vcmask 1042434  }
  0xbf   : > { %v2814_v1 = vld [vmem:[%s3438_s27] sm:$0xff]   ;;  %2327 = vmatprep.subr.bf16.mxu0 %v2813_v0  ;;  %v2816_v3 = vld [vmem:[%s3438_s27 + $0x8] sm:$0xff]   ;;  %v2817_v4 = vld [vmem:[%s3438_s27 + $0x50] sm:$0xff]   ;;  %vm1945_vm2 = vcmask 1043459   ;;  %vm1947_vm3 = vcmask 1044484   ;;  %vm1949_vm4 = vcmask 1045509  }
  0xc0   : > { %2328 = vmatpush3.bf16.msra.mxu0 %v2814_v1  ;;  %v2818_v5 = vld [vmem:[%s3438_s27 + $0x10] sm:$0xff]   ;;  %v2819_v6 = vld [vmem:[%s3438_s27 + $0x58] sm:$0xff]   ;;  %v2821_v8 = vld [vmem:[%s3438_s27 + $0x60] sm:$0xff]   ;;  %vm1951_vm5 = vcmask 1046534   ;;  %vm1953_vm6 = vcmask 1047559   ;;  %s2242_s18 = sshll.u32 %s3426_s25, 5 }
  0xc1   : > { %2329 = vmatprep.subr.bf16.mxu0 %v2815_v2  ;;  %v2820_v7 = vld [vmem:[%s3438_s27 + $0x18] sm:$0xff]   ;;  %v2822_v9 = vld [vmem:[%s3438_s27 + $0x20] sm:$0xff]   ;;  %v2823_v10 = vld [vmem:[%s3438_s27 + $0x68] sm:$0xff]   ;;  %s407_s10 = scalar_lea.vmem [#allocation11], %s2242_s18  ;;  %s2326_s6 = sshll.u32 %s3203_s9, 9 }
  0xc2   : > { %v3464_v11 = vld [vmem:[%s3430_s17 + $0x4] ss:$8 sps:$4 sm:$0xff]   ;;  %v2825_v13 = vld [vmem:[%s3438_s27 + $0x70] sm:$0xff]   ;;  %v2827_v15 = vld [vmem:[%s3438_s27 + $0x78] sm:$0xff]   ;;  %s2099_s15 = sshll.u32 %s407_s10, 4  ;;  %s3761_s24 = scalar_lea.hbm %s3813_s8, %s2326_s6  ;;  %s3756_s15 = int_to_ptr.vmem [resolvable:$true] %s2099_s15 }
  0xc3   : > { %v2824_v12 = vld [vmem:[%s3438_s27 + $0x28] sm:$0xff]   ;;  %764 = vmatprep.mubr.bf16.mxu0 %v3464_v11  ;;  %v2826_v14 = vld [vmem:[%s3438_s27 + $0x30] sm:$0xff]   ;;  %v2828_v16 = vld [vmem:[%s3438_s27 + $0x38] sm:$0xff]   ;;  %s2086_s9 = scalar_lea.sflag [#allocation4], %s3426_s25  ;;  %s3134_s2 = smov [#allocation11]  }
  0xc4   : > { %2330 = vmatpush3.bf16.msra.mxu0 %v2816_v3  ;;  %v3473_v17 = vld [vmem:[%s3430_s17] ss:$8 sps:$4 sm:$0xff]   ;;  %v3476_v18 = vld [vmem:[%s3430_s17 + $0x14] ss:$8 sps:$4 sm:$0xff]   ;;  %v3481_v19 = vld [vmem:[%s3430_s17 + $0x10] ss:$8 sps:$4 sm:$0xff]  }
  0xc5   : > { %2331 = vmatprep.subr.bf16.mxu0 %v2817_v4  ;;  %v3484_v20 = vld [vmem:[%s3430_s17 + $0x24] ss:$8 sps:$4 sm:$0xff]   ;;  %v2879_v23 = vld [vmem:[#allocation7 + $0x10] sm:$0xff]   ;;  %v3489_v24 = vld [vmem:[%s3430_s17 + $0x20] ss:$8 sps:$4 sm:$0xff]   ;;  %s3049_s4 = sshll.u32 %s3134_s2, 4  ;;  %s3050_s4 = int_to_ptr.vmem [resolvable:$false] %s3049_s4 }
  0xc6   : > { %v2877_v21 = vld [vmem:[#allocation7] sm:$0xff]   ;;  %v2878_v22 = vld [vmem:[#allocation7 + $0x8] sm:$0xff]   ;;  %v2880_v25 = vld [vmem:[#allocation7 + $0x18] sm:$0xff]   ;;  %s3051_s13 = scalar_lea.vmem %s3050_s4, 1024  ;;  %p3052_p8 = scmp.lt.s32.totalorder %s3756_s15, %s3050_s4 }
  0xc7   : > { %2609 = vmatprep.subr.bf16.mxu1 %v2877_v21  ;;  %v3492_v26 = vld [vmem:[%s3430_s17 + $0x34] ss:$8 sps:$4 sm:$0xff]   ;;  %v3497_v27 = vld [vmem:[%s3430_s17 + $0x30] ss:$8 sps:$4 sm:$0xff]   ;;  %v3500_v28 = vld [vmem:[%s3430_s17 + $0x44] ss:$8 sps:$4 sm:$0xff]  }
  0xc8   : > { %2332 = vmatpush3.bf16.msra.mxu0 %v2818_v5  ;;  %2610 = vmatpush3.bf16.msra.mxu1 %v2877_v21  ;;  %v3505_v29 = vld [vmem:[%s3430_s17 + $0x40] ss:$8 sps:$4 sm:$0xff]   ;;  %v3508_v30 = vld [vmem:[%s3430_s17 + $0x54] ss:$8 sps:$4 sm:$0xff]   ;;  %v3513_v31 = vld [vmem:[%s3430_s17 + $0x50] ss:$8 sps:$4 sm:$0xff]  }
  0xc9   : > { %2333 = vmatprep.subr.bf16.mxu0 %v2819_v6  ;;  %2611 = vmatprep.subr.bf16.mxu1 %v2878_v22  ;;  %v3516_v32 = vld [vmem:[%s3430_s17 + $0x64] ss:$8 sps:$4 sm:$0xff]   ;;  %v3521_v33 = vld [vmem:[%s3430_s17 + $0x60] ss:$8 sps:$4 sm:$0xff]   ;;  %v3524_v34 = vld [vmem:[%s3430_s17 + $0x74] ss:$8 sps:$4 sm:$0xff]  }
  0xca   : > { %v3529_v35 = vld [vmem:[%s3430_s17 + $0x70] ss:$8 sps:$4 sm:$0xff]   ;;  %v3532_v36 = vld [vmem:[%s3430_s17 + $0x84] ss:$8 sps:$4 sm:$0xff]   ;;  %v3537_v37 = vld [vmem:[%s3430_s17 + $0x80] ss:$8 sps:$4 sm:$0xff]  }
  0xcb   : > { %v3540_v38 = vld [vmem:[%s3430_s17 + $0x94] ss:$8 sps:$4 sm:$0xff]   ;;  %v3545_v39 = vld [vmem:[%s3430_s17 + $0x90] ss:$8 sps:$4 sm:$0xff]   ;;  %v3548_v40 = vld [vmem:[%s3430_s17 + $0xa4] ss:$8 sps:$4 sm:$0xff]  }
  0xcc   : > { %2334 = vmatpush3.bf16.msra.mxu0 %v2820_v7  ;;  %2612 = vmatpush3.bf16.msra.mxu1 %v2878_v22  ;;  %v3553_v41 = vld [vmem:[%s3430_s17 + $0xa0] ss:$8 sps:$4 sm:$0xff]   ;;  %v3556_v42 = vld [vmem:[%s3430_s17 + $0xb4] ss:$8 sps:$4 sm:$0xff]   ;;  %v3561_v44 = vld [vmem:[%s3430_s17 + $0xb0] ss:$8 sps:$4 sm:$0xff]  }
  0xcd   : > { %2335 = vmatprep.subr.bf16.mxu0 %v2821_v8  ;;  %2613 = vmatprep.subr.bf16.mxu1 %v2879_v23  ;;  %v2881_v43 = vld [vmem:[#allocation7 + $0x20] sm:$0xff]   ;;  %v2882_v46 = vld [vmem:[#allocation7 + $0x28] sm:$0xff]   ;;  %v2883_v47 = vld [vmem:[#allocation7 + $0x30] sm:$0xff]  }
  0xce   : > { %v3564_v45 = vld [vmem:[%s3430_s17 + $0xc4] ss:$8 sps:$4 sm:$0xff]   ;;  %v3569_v48 = vld [vmem:[%s3430_s17 + $0xc0] ss:$8 sps:$4 sm:$0xff]   ;;  %v3572_v49 = vld [vmem:[%s3430_s17 + $0xd4] ss:$8 sps:$4 sm:$0xff]  }
  0xcf   : > { %v2884_v50 = vld [vmem:[#allocation7 + $0x38] sm:$0xff]   ;;  %v3580_v52 = vld [vmem:[%s3430_s17 + $0xe4] ss:$8 sps:$4 sm:$0xff]   ;;  %v3585_v53 = vld [vmem:[%s3430_s17 + $0xe0] ss:$8 sps:$4 sm:$0xff]  }
  0xd0   : > { %2336 = vmatpush3.bf16.msra.mxu0 %v2822_v9  ;;  %2614 = vmatpush3.bf16.msra.mxu1 %v2879_v23  ;;  %v3577_v51 = vld [vmem:[%s3430_s17 + $0xd0] ss:$8 sps:$4 sm:$0xff]   ;;  %v3588_v54 = vld [vmem:[%s3430_s17 + $0xf4] ss:$8 sps:$4 sm:$0xff]  }
  0xd1   : > { %2337 = vmatprep.subr.bf16.mxu0 %v2823_v10  ;;  %2615 = vmatprep.subr.bf16.mxu1 %v2880_v25  ;;  %v3593_v55 = vld [vmem:[%s3430_s17 + $0xf0] ss:$8 sps:$4 sm:$0xff]   ;;  %s3045_s17 = scalar_lea.vmem %s3756_s15, 512 }
  0xd2   : > { %p3046_p2 = scmp.ne.s32.totalorder %s3756_s15, %s3045_s17  ;;  %p3053_p6 = scmp.lt.s32.totalorder %s3051_s13, %s3045_s17 }
  0xd4   : > { %2338 = vmatpush3.bf16.msra.mxu0 %v2824_v12  ;;  %2616 = vmatpush3.bf16.msra.mxu1 %v2880_v25  ;;  %p3047_p4 = pnand %p3046_p2, %p3336_p5  ;;  %p3054_p10 = por %p3053_p6, %p3052_p8 }
  0xd5   : > { %2339 = vmatprep.subr.bf16.mxu0 %v2825_v13  ;;  %2617 = vmatprep.subr.bf16.mxu1 %v2881_v43 }
  0xd6   : > { %p3048_p0 = pneg %p3047_p4 }
  0xd8   : > { %2340 = vmatpush3.bf16.msra.mxu0 %v2826_v14  ;;  %2618 = vmatpush3.bf16.msra.mxu1 %v2881_v43  ;;  %p3055_p3 = pnand %p3054_p10, %p3048_p0 }
  0xd9   : > { %2341 = vmatprep.subr.bf16.mxu0 %v2827_v15  ;;  %2619 = vmatprep.subr.bf16.mxu1 %v2882_v46 }
  0xdc   : > { %2342 = vmatpush3.bf16.msra.mxu0 %v2828_v16  ;;  %2620 = vmatpush3.bf16.msra.mxu1 %v2882_v46 }
  0xdd   : > { %2621 = vmatprep.subr.bf16.mxu1 %v2883_v47 }
  0xdf   : > { %765 = vmatmul.mubr.bf16.vlgmr.msra.gmra.mrb[0].mxu0 %v3473_v17 }
  0xe0   : > { %772 = vmatprep.mubr.bf16.mxu0 %v3476_v18  ;;  %2622 = vmatpush3.bf16.msra.mxu1 %v2883_v47 }
  0xe1   : > { %2623 = vmatprep.subr.bf16.mxu1 %v2884_v50 }
  0xe4   : > { %2624 = vmatpush3.bf16.msra.mxu1 %v2884_v50 }
  0xe7   : > { %773 = vmatmul.mubr.bf16.gmra.mrb[4].mxu0 %v3481_v19 }
  0xe8   : > { %780 = vmatprep.mubr.bf16.mxu0 %v3484_v20 }
  0xef   : > { %781 = vmatmul.mubr.bf16.gmra.mrb[8].mxu0 %v3489_v24 }
  0xf0   : > { %788 = vmatprep.mubr.bf16.mxu0 %v3492_v26 }
  0xf7   : > { %789 = vmatmul.mubr.bf16.gmra.mrb[12].mxu0 %v3497_v27 }
  0xf8   : > { %796 = vmatprep.mubr.bf16.mxu0 %v3500_v28 }
  0xff   : > { %797 = vmatmul.mubr.bf16.gmra.mrb[16].mxu0 %v3505_v29 }
 0x100   : > { %804 = vmatprep.mubr.bf16.mxu0 %v3508_v30 }
 0x107   : > { %805 = vmatmul.mubr.bf16.gmra.mrb[20].mxu0 %v3513_v31 }
 0x108   : > { %812 = vmatprep.mubr.bf16.mxu0 %v3516_v32 }
 0x10f   : > { %813 = vmatmul.mubr.bf16.gmra.mrb[24].mxu0 %v3521_v33 }
 0x110   : > { %820 = vmatprep.mubr.bf16.mxu0 %v3524_v34 }
 0x117   : > { %821 = vmatmul.mubr.bf16.gmra.mrb[28].mxu0 %v3529_v35 }
 0x118   : > { %828 = vmatprep.mubr.bf16.mxu0 %v3532_v36 }
 0x11f   : > { %829 = vmatmul.mubr.bf16.gmra.mrb[32].mxu0 %v3537_v37 }
 0x120   : > { %836 = vmatprep.mubr.bf16.mxu0 %v3540_v38 }
 0x127   : > { %837 = vmatmul.mubr.bf16.gmra.mrb[36].mxu0 %v3545_v39 }
 0x128   : > { %844 = vmatprep.mubr.bf16.mxu0 %v3548_v40 }
 0x12f   : > { %845 = vmatmul.mubr.bf16.gmra.mrb[40].mxu0 %v3553_v41 }
 0x130   : > { %852 = vmatprep.mubr.bf16.mxu0 %v3556_v42 }
 0x137   : > { %853 = vmatmul.mubr.bf16.gmra.mrb[44].mxu0 %v3561_v44 }
 0x138   : > { %860 = vmatprep.mubr.bf16.mxu0 %v3564_v45 }
 0x13f   : > { %861 = vmatmul.mubr.bf16.gmra.mrb[48].mxu0 %v3569_v48 }
 0x140   : > { %868 = vmatprep.mubr.bf16.mxu0 %v3572_v49 }
 0x147   : > { %869 = vmatmul.mubr.bf16.gmra.mrb[52].mxu0 %v3577_v51 }
 0x148   : > { %876 = vmatprep.mubr.bf16.mxu0 %v3580_v52 }
 0x14f   : > { %877 = vmatmul.mubr.bf16.gmra.mrb[56].mxu0 %v3585_v53 }
 0x150   : > { %884 = vmatprep.mubr.bf16.mxu0 %v3588_v54 }
 0x157   : > { %885 = vmatmul.mubr.bf16.gmra.mrb[60].mxu0 %v3593_v55 }
 0x1b2   : > { %v2343_v56 = vpop.f32.mrb[0].mxu0 }
 0x1b3   : > { %v2344_v57 = vpop.f32.mrb[1].mxu0 }
 0x1b4   : > { %v2345_v58 = vadd.f32 %v2344_v57, %v2343_v56  ;;  %v2346_v59 = vpop.f32.mrb[2].mxu0 }
 0x1b5   : > { %v2347_v60 = vpop.f32.mrb[3].mxu0 }
 0x1b6   : > { %v2348_v61 = vadd.f32 %v2347_v60, %v2346_v59 }
 0x1b8   : > { %v893_v62 = vpack.c.bf16 %v2348_v61, %v2345_v58 }
 0x1ba   : > { %v2349_v63 = vpop.f32.mrb[4].mxu0  ;;  %2625 = vmatprep.mubr.bf16.mxu1 %v893_v62 }
 0x1bb   : > { %v2350_v0 = vpop.f32.mrb[5].mxu0 }
 0x1bc   : > { %v2351_v1 = vadd.f32 %v2350_v0, %v2349_v63  ;;  %v2352_v2 = vpop.f32.mrb[6].mxu0 }
 0x1bd   : > { %v2353_v3 = vpop.f32.mrb[7].mxu0 }
 0x1be   : > { %v2354_v4 = vadd.f32 %v2353_v3, %v2352_v2 }
 0x1c0   : > { %v894_v5 = vpack.c.bf16 %v2354_v4, %v2351_v1 }
 0x1c2   : > { %v2355_v6 = vpop.f32.mrb[8].mxu0  ;;  %2626 = vmatmul.mubr.bf16.vlgmr.msra.gmra.mrb[0].mxu1 %v894_v5 }
 0x1c3   : > { %v2356_v7 = vpop.f32.mrb[9].mxu0 }
 0x1c4   : > { %v2357_v8 = vadd.f32 %v2356_v7, %v2355_v6  ;;  %v2358_v9 = vpop.f32.mrb[10].mxu0 }
 0x1c5   : > { %v2359_v10 = vpop.f32.mrb[11].mxu0 }
 0x1c6   : > { %v2360_v12 = vadd.f32 %v2359_v10, %v2358_v9 }
 0x1c8   : > { %v895_v13 = vpack.c.bf16 %v2360_v12, %v2357_v8 }
 0x1ca   : > { %v2361_v14 = vpop.f32.mrb[12].mxu0  ;;  %2629 = vmatprep.mubr.bf16.mxu1 %v895_v13 }
 0x1cb   : > { %v2362_v15 = vpop.f32.mrb[13].mxu0 }
 0x1cc   : > { %v2363_v16 = vadd.f32 %v2362_v15, %v2361_v14  ;;  %v2364_v21 = vpop.f32.mrb[14].mxu0 }
 0x1cd   : > { %v2365_v22 = vpop.f32.mrb[15].mxu0 }
 0x1ce   : > { %v2366_v23 = vadd.f32 %v2365_v22, %v2364_v21 }
 0x1d0   : > { %v896_v25 = vpack.c.bf16 %v2366_v23, %v2363_v16 }
 0x1d2   : > { %v2367_v43 = vpop.f32.mrb[16].mxu0  ;;  %2630 = vmatmul.mubr.bf16.gmra.mrb[4].mxu1 %v896_v25 }
 0x1d3   : > { %v2368_v46 = vpop.f32.mrb[17].mxu0 }
 0x1d4   : > { %v2369_v47 = vadd.f32 %v2368_v46, %v2367_v43  ;;  %v2370_v50 = vpop.f32.mrb[18].mxu0 }
 0x1d5   : > { %v2371_v56 = vpop.f32.mrb[19].mxu0 }
 0x1d6   : > { %v2372_v57 = vadd.f32 %v2371_v56, %v2370_v50 }
 0x1d8   : > { %v897_v58 = vpack.c.bf16 %v2372_v57, %v2369_v47 }
 0x1da   : > { %v2373_v59 = vpop.f32.mrb[20].mxu0  ;;  %2633 = vmatprep.mubr.bf16.mxu1 %v897_v58 }
 0x1db   : > { %v2374_v60 = vpop.f32.mrb[21].mxu0 }
 0x1dc   : > { %v2375_v61 = vadd.f32 %v2374_v60, %v2373_v59  ;;  %v2376_v62 = vpop.f32.mrb[22].mxu0 }
 0x1dd   : > { %v2377_v63 = vpop.f32.mrb[23].mxu0 }
 0x1de   : > { %v2378_v0 = vadd.f32 %v2377_v63, %v2376_v62 }
 0x1e0   : > { %v898_v1 = vpack.c.bf16 %v2378_v0, %v2375_v61 }
 0x1e2   : > { %v2379_v2 = vpop.f32.mrb[24].mxu0  ;;  %2634 = vmatmul.mubr.bf16.gmra.mrb[8].mxu1 %v898_v1 }
 0x1e3   : > { %v2380_v3 = vpop.f32.mrb[25].mxu0 }
 0x1e4   : > { %v2381_v4 = vadd.f32 %v2380_v3, %v2379_v2  ;;  %v2382_v5 = vpop.f32.mrb[26].mxu0 }
 0x1e5   : > { %v2383_v6 = vpop.f32.mrb[27].mxu0 }
 0x1e6   : > { %v2384_v7 = vadd.f32 %v2383_v6, %v2382_v5 }
 0x1e8   : > { %v899_v8 = vpack.c.bf16 %v2384_v7, %v2381_v4 }
 0x1ea   : > { %v2385_v9 = vpop.f32.mrb[28].mxu0  ;;  %2637 = vmatprep.mubr.bf16.mxu1 %v899_v8 }
 0x1eb   : > { %v2386_v10 = vpop.f32.mrb[29].mxu0 }
 0x1ec   : > { %v2387_v12 = vadd.f32 %v2386_v10, %v2385_v9  ;;  %v2388_v13 = vpop.f32.mrb[30].mxu0 }
 0x1ed   : > { %v2389_v14 = vpop.f32.mrb[31].mxu0 }
 0x1ee   : > { %v2390_v15 = vadd.f32 %v2389_v14, %v2388_v13 }
 0x1f0   : > { %v900_v16 = vpack.c.bf16 %v2390_v15, %v2387_v12 }
 0x1f2   : > { %v2391_v21 = vpop.f32.mrb[32].mxu0  ;;  %2638 = vmatmul.mubr.bf16.gmra.mrb[12].mxu1 %v900_v16 }
 0x1f3   : > { %v2392_v22 = vpop.f32.mrb[33].mxu0 }
 0x1f4   : > { %v2393_v23 = vadd.f32 %v2392_v22, %v2391_v21  ;;  %v2394_v25 = vpop.f32.mrb[34].mxu0 }
 0x1f5   : > { %v2395_v43 = vpop.f32.mrb[35].mxu0 }
 0x1f6   : > { %v2396_v46 = vadd.f32 %v2395_v43, %v2394_v25 }
 0x1f8   : > { %v901_v47 = vpack.c.bf16 %v2396_v46, %v2393_v23 }
 0x1fa   : > { %v2397_v50 = vpop.f32.mrb[36].mxu0  ;;  %2641 = vmatprep.mubr.bf16.mxu1 %v901_v47 }
 0x1fb   : > { %v2398_v56 = vpop.f32.mrb[37].mxu0 }
 0x1fc   : > { %v2399_v57 = vadd.f32 %v2398_v56, %v2397_v50  ;;  %v2400_v58 = vpop.f32.mrb[38].mxu0 }
 0x1fd   : > { %v2401_v59 = vpop.f32.mrb[39].mxu0 }
 0x1fe   : > { %v2402_v60 = vadd.f32 %v2401_v59, %v2400_v58 }
 0x200   : > { %v902_v61 = vpack.c.bf16 %v2402_v60, %v2399_v57 }
 0x202   : > { %v2403_v62 = vpop.f32.mrb[40].mxu0  ;;  %2642 = vmatmul.mubr.bf16.gmra.mrb[16].mxu1 %v902_v61 }
 0x203   : > { %v2404_v63 = vpop.f32.mrb[41].mxu0 }
 0x204   : > { %v2405_v0 = vadd.f32 %v2404_v63, %v2403_v62  ;;  %v2406_v1 = vpop.f32.mrb[42].mxu0 }
 0x205   : > { %v2407_v2 = vpop.f32.mrb[43].mxu0 }
 0x206   : > { %v2408_v3 = vadd.f32 %v2407_v2, %v2406_v1 }
 0x208   : > { %v903_v4 = vpack.c.bf16 %v2408_v3, %v2405_v0 }
 0x20a   : > { %v2409_v5 = vpop.f32.mrb[44].mxu0  ;;  %2645 = vmatprep.mubr.bf16.mxu1 %v903_v4 }
 0x20b   : > { %v2410_v6 = vpop.f32.mrb[45].mxu0 }
 0x20c   : > { %v2411_v7 = vadd.f32 %v2410_v6, %v2409_v5  ;;  %v2412_v8 = vpop.f32.mrb[46].mxu0 }
 0x20d   : > { %v2413_v9 = vpop.f32.mrb[47].mxu0 }
 0x20e   : > { %v2414_v10 = vadd.f32 %v2413_v9, %v2412_v8  ;;  %v3600_v8 = vld [vmem:[%s3808_s3] ss:$0 sm:$0xff] }
 0x210   : > { %v904_v12 = vpack.c.bf16 %v2414_v10, %v2411_v7 }
 0x212   : > { %v2415_v13 = vpop.f32.mrb[48].mxu0  ;;  %2646 = vmatmul.mubr.bf16.gmra.mrb[20].mxu1 %v904_v12 }
 0x213   : > { %v2416_v14 = vpop.f32.mrb[49].mxu0 }
 0x214   : > { %v2417_v15 = vadd.f32 %v2416_v14, %v2415_v13  ;;  %v2418_v16 = vpop.f32.mrb[50].mxu0 }
 0x215   : > { %v2419_v21 = vpop.f32.mrb[51].mxu0 }
 0x216   : > { %v2420_v22 = vadd.f32 %v2419_v21, %v2418_v16 }
 0x218   : > { %v905_v23 = vpack.c.bf16 %v2420_v22, %v2417_v15 }
 0x21a   : > { %v2421_v25 = vpop.f32.mrb[52].mxu0  ;;  %2649 = vmatprep.mubr.bf16.mxu1 %v905_v23 }
 0x21b   : > { %v2422_v43 = vpop.f32.mrb[53].mxu0 }
 0x21c   : > { %v2423_v46 = vadd.f32 %v2422_v43, %v2421_v25  ;;  %v2424_v47 = vpop.f32.mrb[54].mxu0 }
 0x21d   : > { %v2425_v50 = vpop.f32.mrb[55].mxu0 }
 0x21e   : > { %v2426_v56 = vadd.f32 %v2425_v50, %v2424_v47 }
 0x220   : > { %v906_v57 = vpack.c.bf16 %v2426_v56, %v2423_v46 }
 0x222   : > { %v2427_v58 = vpop.f32.mrb[56].mxu0  ;;  %2650 = vmatmul.mubr.bf16.gmra.mrb[24].mxu1 %v906_v57 }
 0x223   : > { %v2428_v59 = vpop.f32.mrb[57].mxu0 }
 0x224   : > { %v2429_v60 = vadd.f32 %v2428_v59, %v2427_v58  ;;  %v2430_v61 = vpop.f32.mrb[58].mxu0 }
 0x225   : > { %v2431_v62 = vpop.f32.mrb[59].mxu0 }
 0x226   : > { %v2432_v63 = vadd.f32 %v2431_v62, %v2430_v61 }
 0x228   : > { %v907_v0 = vpack.c.bf16 %v2432_v63, %v2429_v60 }
 0x22a   : > { %v2433_v1 = vpop.f32.mrb[60].mxu0  ;;  %2653 = vmatprep.mubr.bf16.mxu1 %v907_v0 }
 0x22b   : > { %v2434_v2 = vpop.f32.mrb[61].mxu0 }
 0x22c   : > { %v2435_v3 = vadd.f32 %v2434_v2, %v2433_v1  ;;  %v2436_v4 = vpop.f32.mrb[62].mxu0 }
 0x22d   : > { %v2437_v5 = vpop.f32.mrb[63].mxu0 }
 0x22e   : > { %v2438_v6 = vadd.f32 %v2437_v5, %v2436_v4 }
 0x230   : > { %v908_v7 = vpack.c.bf16 %v2438_v6, %v2435_v3 }
 0x232   : > { %2654 = vmatmul.mubr.bf16.gmra.mrb[28].mxu1 %v908_v7 }
 0x233   : > { %1221 = vmatprep.mubr.bf16.mxu1 %v3464_v11 }
 0x295   : > { %v2627_v9 = vpop.f32.mrb[0].mxu1 }
 0x296   : > { %v1023_v10 = vadd.f32 %v2627_v9, %v3600_v8  ;;  %v1014_v12 = vpop.f32.mrb[1].mxu1 }
 0x297   : > { %v1015_v13 = vadd.f32 %v3600_v8, %v1014_v12  ;;  %v2628_v14 = vpop.f32.mrb[2].mxu1 }
 0x298   : > { %v1026_v15 = vadd.f32 %v2628_v14, %v3600_v8  ;;  %v1017_v16 = vpop.f32.mrb[3].mxu1  ;;  %v1143_v22 = vmax.f32 %v1023_v10, 0.0 }
 0x299   : > { %v1018_v21 = vadd.f32 %v3600_v8, %v1017_v16  ;;  %v1141_v11 = vmax.f32 %v1015_v13, 0.0 }
 0x29a   : > { %v1144_v23 = vmax.f32 %v1026_v15, 0.0 }
 0x29b   : > { %v1142_v25 = vmax.f32 %v1018_v21, 0.0 }
 0x29c   : > { %v1174_v43 = vpack.c.bf16 %v1144_v23, %v1143_v22 }
 0x29d   : > { %v1173_v46 = vpack.c.bf16 %v1142_v25, %v1141_v11 }
 0x2a5   : > { %v2631_v47 = vpop.f32.mrb[4].mxu1 }
 0x2a6   : > { %v1039_v50 = vadd.f32 %v2631_v47, %v3600_v8  ;;  %v1030_v56 = vpop.f32.mrb[5].mxu1 }
 0x2a7   : > { %v1031_v57 = vadd.f32 %v3600_v8, %v1030_v56  ;;  %v2632_v58 = vpop.f32.mrb[6].mxu1 }
 0x2a8   : > { %v1042_v59 = vadd.f32 %v2632_v58, %v3600_v8  ;;  %v1033_v60 = vpop.f32.mrb[7].mxu1  ;;  %v1147_v62 = vmax.f32 %v1039_v50, 0.0 }
 0x2a9   : > { %v1034_v61 = vadd.f32 %v3600_v8, %v1033_v60  ;;  %v1145_v0 = vmax.f32 %v1031_v57, 0.0 }
 0x2aa   : > { %v1148_v63 = vmax.f32 %v1042_v59, 0.0 }
 0x2ab   : > { %v1146_v1 = vmax.f32 %v1034_v61, 0.0 }
 0x2ac   : > { %v3610_v2 = vpack.c.bf16 %v1148_v63, %v1147_v62 }
 0x2ad   : > { %v1175_v3 = vpack.c.bf16 %v1146_v1, %v1145_v0 }
 0x2b5   : > { %v2635_v4 = vpop.f32.mrb[8].mxu1 }
 0x2b6   : > { %v1055_v5 = vadd.f32 %v2635_v4, %v3600_v8  ;;  %v1046_v6 = vpop.f32.mrb[9].mxu1 }
 0x2b7   : > { %v1047_v7 = vadd.f32 %v3600_v8, %v1046_v6  ;;  %v2636_v9 = vpop.f32.mrb[10].mxu1 }
 0x2b8   : > { %v1058_v10 = vadd.f32 %v2636_v9, %v3600_v8  ;;  %v1049_v12 = vpop.f32.mrb[11].mxu1  ;;  %v1151_v14 = vmax.f32 %v1055_v5, 0.0 }
 0x2b9   : > { %v1050_v13 = vadd.f32 %v3600_v8, %v1049_v12  ;;  %v1149_v16 = vmax.f32 %v1047_v7, 0.0 }
 0x2ba   : > { %v1152_v15 = vmax.f32 %v1058_v10, 0.0 }
 0x2bb   : > { %v1150_v21 = vmax.f32 %v1050_v13, 0.0 }
 0x2bc   : > { %v3616_v22 = vpack.c.bf16 %v1152_v15, %v1151_v14 }
 0x2bd   : > { %v3618_v23 = vpack.c.bf16 %v1150_v21, %v1149_v16 }
 0x2c5   : > { %v2639_v11 = vpop.f32.mrb[12].mxu1 }
 0x2c6   : > { %v1071_v25 = vadd.f32 %v2639_v11, %v3600_v8  ;;  %v1062_v47 = vpop.f32.mrb[13].mxu1 }
 0x2c7   : > { %v1063_v50 = vadd.f32 %v3600_v8, %v1062_v47  ;;  %v2640_v56 = vpop.f32.mrb[14].mxu1 }
 0x2c8   : > { %v1074_v57 = vadd.f32 %v2640_v56, %v3600_v8  ;;  %v1065_v58 = vpop.f32.mrb[15].mxu1  ;;  %v1155_v60 = vmax.f32 %v1071_v25, 0.0 }
 0x2c9   : > { %v1066_v59 = vadd.f32 %v3600_v8, %v1065_v58  ;;  %v1153_v62 = vmax.f32 %v1063_v50, 0.0 }
 0x2ca   : > { %v1156_v61 = vmax.f32 %v1074_v57, 0.0 }
 0x2cb   : > { %v1154_v63 = vmax.f32 %v1066_v59, 0.0 }
 0x2cc   : > { %v3624_v0 = vpack.c.bf16 %v1156_v61, %v1155_v60 }
 0x2cd   : > { %v3626_v1 = vpack.c.bf16 %v1154_v63, %v1153_v62 }
 0x2d5   : > { %v2643_v4 = vpop.f32.mrb[16].mxu1 }
 0x2d6   : > { %v1087_v5 = vadd.f32 %v2643_v4, %v3600_v8  ;;  %v1078_v6 = vpop.f32.mrb[17].mxu1 }
 0x2d7   : > { %v1079_v7 = vadd.f32 %v3600_v8, %v1078_v6  ;;  %v2644_v9 = vpop.f32.mrb[18].mxu1 }
 0x2d8   : > { %v1090_v10 = vadd.f32 %v2644_v9, %v3600_v8  ;;  %v1081_v12 = vpop.f32.mrb[19].mxu1  ;;  %v1159_v14 = vmax.f32 %v1087_v5, 0.0 }
 0x2d9   : > { %v1082_v13 = vadd.f32 %v3600_v8, %v1081_v12  ;;  %v1157_v16 = vmax.f32 %v1079_v7, 0.0 }
 0x2da   : > { %v1160_v15 = vmax.f32 %v1090_v10, 0.0 }
 0x2db   : > { %v1158_v21 = vmax.f32 %v1082_v13, 0.0 }
 0x2dc   : > { %v1182_v11 = vpack.c.bf16 %v1160_v15, %v1159_v14 }
 0x2dd   : > { %v1181_v25 = vpack.c.bf16 %v1158_v21, %v1157_v16 }
 0x2df   : > { %2463 = vmatprep.subr.bf16.mxu1 %v1181_v25 }
 0x2e0   : > { %2464 = vmatpush3.bf16.msra.mxu1 %v1173_v46 }
 0x2e1   : > { %2465 = vmatprep.subr.bf16.mxu1 %v1182_v11 }
 0x2e4   : > { %2466 = vmatpush3.bf16.msra.mxu1 %v1174_v43 }
 0x2e5   : > { %v2647_v47 = vpop.f32.mrb[20].mxu1 }
 0x2e6   : > { %v1103_v50 = vadd.f32 %v2647_v47, %v3600_v8  ;;  %v1094_v56 = vpop.f32.mrb[21].mxu1 }
 0x2e7   : > { %v1095_v57 = vadd.f32 %v3600_v8, %v1094_v56  ;;  %v2648_v58 = vpop.f32.mrb[22].mxu1 }
 0x2e8   : > { %v1106_v59 = vadd.f32 %v2648_v58, %v3600_v8  ;;  %v1097_v60 = vpop.f32.mrb[23].mxu1  ;;  %v1163_v62 = vmax.f32 %v1103_v50, 0.0 }
 0x2e9   : > { %v1098_v61 = vadd.f32 %v3600_v8, %v1097_v60  ;;  %v1161_v4 = vmax.f32 %v1095_v57, 0.0 }
 0x2ea   : > { %v1164_v63 = vmax.f32 %v1106_v59, 0.0 }
 0x2eb   : > { %v1162_v5 = vmax.f32 %v1098_v61, 0.0 }
 0x2ec   : > { %v1184_v6 = vpack.c.bf16 %v1164_v63, %v1163_v62 }
 0x2ed   : > { %v1183_v46 = vpack.c.bf16 %v1162_v5, %v1161_v4 }
 0x2ef   : > { %2467 = vmatprep.subr.bf16.mxu1 %v1183_v46  ;;  %v2886_v46 = vld [vmem:[#allocation8 + $0x8] sm:$0xff]  }
 0x2f0   : > { %2468 = vmatpush3.bf16.msra.mxu1 %v1175_v3 }
 0x2f1   : > { %2469 = vmatprep.subr.bf16.mxu1 %v1184_v6 }
 0x2f4   : > { %2470 = vmatpush3.bf16.msra.mxu1 %v3610_v2 }
 0x2f5   : > { %v2651_v43 = vpop.f32.mrb[24].mxu1 }
 0x2f6   : > { %v1119_v7 = vadd.f32 %v2651_v43, %v3600_v8  ;;  %v1110_v9 = vpop.f32.mrb[25].mxu1  ;;  %v2887_v43 = vld [vmem:[#allocation8 + $0x10] sm:$0xff]  }
 0x2f7   : > { %v1111_v10 = vadd.f32 %v3600_v8, %v1110_v9  ;;  %v2652_v12 = vpop.f32.mrb[26].mxu1 }
 0x2f8   : > { %v1122_v13 = vadd.f32 %v2652_v12, %v3600_v8  ;;  %v1113_v14 = vpop.f32.mrb[27].mxu1  ;;  %v1167_v16 = vmax.f32 %v1119_v7, 0.0  ;;  %v2889_v7 = vld [vmem:[#allocation8 + $0x20] sm:$0xff]  }
 0x2f9   : > { %v1114_v15 = vadd.f32 %v3600_v8, %v1113_v14  ;;  %v1165_v11 = vmax.f32 %v1111_v10, 0.0 }
 0x2fa   : > { %v1168_v21 = vmax.f32 %v1122_v13, 0.0 }
 0x2fb   : > { %v1166_v25 = vmax.f32 %v1114_v15, 0.0 }
 0x2fc   : > { %v1186_v3 = vpack.c.bf16 %v1168_v21, %v1167_v16 }
 0x2fd   : > { %v1185_v47 = vpack.c.bf16 %v1166_v25, %v1165_v11 }
 0x2ff   : > { %2471 = vmatprep.subr.bf16.mxu1 %v1185_v47 }
 0x300   : > { %2472 = vmatpush3.bf16.msra.mxu1 %v3618_v23 }
 0x301   : > { %2473 = vmatprep.subr.bf16.mxu1 %v1186_v3 }
 0x304   : > { %2474 = vmatpush3.bf16.msra.mxu1 %v3616_v22  ;;  %v2885_v22 = vld [vmem:[#allocation8] sm:$0xff]  }
 0x305   : > { %v2655_v2 = vpop.f32.mrb[28].mxu1  ;;  %2657 = vmatprep.subr.bf16.mxu0 %v2885_v22 }
 0x306   : > { %v1135_v50 = vadd.f32 %v2655_v2, %v3600_v8  ;;  %v1126_v56 = vpop.f32.mrb[29].mxu1  ;;  %2658 = vmatpush3.bf16.msra.mxu0 %v2885_v22 }
 0x307   : > { %v1127_v57 = vadd.f32 %v3600_v8, %v1126_v56  ;;  %v2656_v58 = vpop.f32.mrb[30].mxu1  ;;  %2659 = vmatprep.subr.bf16.mxu0 %v2886_v46 }
 0x308   : > { %v1138_v59 = vadd.f32 %v2656_v58, %v3600_v8  ;;  %v1129_v60 = vpop.f32.mrb[31].mxu1  ;;  %v1171_v62 = vmax.f32 %v1135_v50, 0.0 }
 0x309   : > { %v1130_v61 = vadd.f32 %v3600_v8, %v1129_v60  ;;  %v1169_v4 = vmax.f32 %v1127_v57, 0.0  ;;  %v2888_v8 = vld [vmem:[#allocation8 + $0x18] sm:$0xff]  }
 0x30a   : > { %v1172_v63 = vmax.f32 %v1138_v59, 0.0  ;;  %2660 = vmatpush3.bf16.msra.mxu0 %v2886_v46 }
 0x30b   : > { %v1170_v5 = vmax.f32 %v1130_v61, 0.0  ;;  %2661 = vmatprep.subr.bf16.mxu0 %v2887_v43 }
 0x30c   : > { %v1188_v23 = vpack.c.bf16 %v1172_v63, %v1171_v62 }
 0x30d   : > { %v1187_v6 = vpack.c.bf16 %v1170_v5, %v1169_v4 }
 0x30e   : > { %2662 = vmatpush3.bf16.msra.mxu0 %v2887_v43 }
 0x30f   : > { %2475 = vmatprep.subr.bf16.mxu1 %v1187_v6  ;;  %2663 = vmatprep.subr.bf16.mxu0 %v2888_v8 }
 0x310   : > { %2476 = vmatpush3.bf16.msra.mxu1 %v3626_v1 }
 0x311   : > { %2477 = vmatprep.subr.bf16.mxu1 %v1188_v23 }
 0x312   : > { %2664 = vmatpush3.bf16.msra.mxu0 %v2888_v8 }
 0x313   : > { %2665 = vmatprep.subr.bf16.mxu0 %v2889_v7 }
 0x314   : > { %2478 = vmatpush3.bf16.msra.mxu1 %v3624_v0 }
 0x316   : > { %2666 = vmatpush3.bf16.msra.mxu0 %v2889_v7 }
 0x317   : > { %1222 = vmatmul.mubr.bf16.vlgmr.msra.gmra.mrb[32].mxu1 %v3473_v17  ;;  %v2890_v17 = vld [vmem:[#allocation8 + $0x28] sm:$0xff]  }
 0x318   : > { %1229 = vmatprep.mubr.bf16.mxu1 %v3476_v18  ;;  %2667 = vmatprep.subr.bf16.mxu0 %v2890_v17  ;;  %v2891_v18 = vld [vmem:[#allocation8 + $0x30] sm:$0xff]  }
 0x31a   : > { %2668 = vmatpush3.bf16.msra.mxu0 %v2890_v17 }
 0x31b   : > { %2669 = vmatprep.subr.bf16.mxu0 %v2891_v18 }
 0x31e   : > { %2670 = vmatpush3.bf16.msra.mxu0 %v2891_v18 }
 0x31f   : > { %1230 = vmatmul.mubr.bf16.gmra.mrb[36].mxu1 %v3481_v19  ;;  %v2892_v19 = vld [vmem:[#allocation8 + $0x38] sm:$0xff]  }
 0x320   : > { %1237 = vmatprep.mubr.bf16.mxu1 %v3484_v20  ;;  %2671 = vmatprep.subr.bf16.mxu0 %v2892_v19 }
 0x322   : > { %2672 = vmatpush3.bf16.msra.mxu0 %v2892_v19 }
 0x327   : > { %1238 = vmatmul.mubr.bf16.gmra.mrb[40].mxu1 %v3489_v24 }
 0x328   : > { %1245 = vmatprep.mubr.bf16.mxu1 %v3492_v26 }
 0x32f   : > { %1246 = vmatmul.mubr.bf16.gmra.mrb[44].mxu1 %v3497_v27 }
 0x330   : > { %1253 = vmatprep.mubr.bf16.mxu1 %v3500_v28 }
 0x337   : > { %1254 = vmatmul.mubr.bf16.gmra.mrb[48].mxu1 %v3505_v29 }
 0x338   : > { %1261 = vmatprep.mubr.bf16.mxu1 %v3508_v30 }
 0x33f   : > { %1262 = vmatmul.mubr.bf16.gmra.mrb[52].mxu1 %v3513_v31 }
 0x340   : > { %1269 = vmatprep.mubr.bf16.mxu1 %v3516_v32 }
 0x347   : > { %1270 = vmatmul.mubr.bf16.gmra.mrb[56].mxu1 %v3521_v33 }
 0x348   : > { %1277 = vmatprep.mubr.bf16.mxu1 %v3524_v34 }
 0x34f   : > { %1278 = vmatmul.mubr.bf16.gmra.mrb[60].mxu1 %v3529_v35 }
 0x350   : > { %1285 = vmatprep.mubr.bf16.mxu1 %v3532_v36 }
 0x357   : > { %1286 = vmatmul.mubr.bf16.gmra.mrb[64].mxu1 %v3537_v37 }
 0x358   : > { %1293 = vmatprep.mubr.bf16.mxu1 %v3540_v38 }
 0x35f   : > { %1294 = vmatmul.mubr.bf16.gmra.mrb[68].mxu1 %v3545_v39 }
 0x360   : > { %1301 = vmatprep.mubr.bf16.mxu1 %v3548_v40 }
 0x367   : > { %1302 = vmatmul.mubr.bf16.gmra.mrb[72].mxu1 %v3553_v41 }
 0x368   : > { %1309 = vmatprep.mubr.bf16.mxu1 %v3556_v42 }
 0x36f   : > { %1310 = vmatmul.mubr.bf16.gmra.mrb[76].mxu1 %v3561_v44 }
 0x370   : > { %1317 = vmatprep.mubr.bf16.mxu1 %v3564_v45 }
 0x377   : > { %1318 = vmatmul.mubr.bf16.gmra.mrb[80].mxu1 %v3569_v48 }
 0x378   : > { %1325 = vmatprep.mubr.bf16.mxu1 %v3572_v49 }
 0x37f   : > { %1326 = vmatmul.mubr.bf16.gmra.mrb[84].mxu1 %v3577_v51 }
 0x380   : > { %1333 = vmatprep.mubr.bf16.mxu1 %v3580_v52 }
 0x387   : > { %1334 = vmatmul.mubr.bf16.gmra.mrb[88].mxu1 %v3585_v53 }
 0x388   : > { %1341 = vmatprep.mubr.bf16.mxu1 %v3588_v54 }
 0x38f   : > { %1342 = vmatmul.mubr.bf16.gmra.mrb[92].mxu1 %v3593_v55 }
 0x3ea   : > { %v2479_v20 = vpop.f32.mrb[32].mxu1 }
 0x3eb   : > { %v2480_v24 = vpop.f32.mrb[33].mxu1 }
 0x3ec   : > { %v2481_v26 = vadd.f32 %v2480_v24, %v2479_v20  ;;  %v2482_v27 = vpop.f32.mrb[34].mxu1 }
 0x3ed   : > { %v2483_v28 = vpop.f32.mrb[35].mxu1 }
 0x3ee   : > { %v2484_v29 = vadd.f32 %v2483_v28, %v2482_v27 }
 0x3f0   : > { %v1350_v30 = vpack.c.bf16 %v2484_v29, %v2481_v26 }
 0x3f2   : > { %v2485_v31 = vpop.f32.mrb[36].mxu1  ;;  %2673 = vmatprep.mubr.bf16.mxu0 %v1350_v30 }
 0x3f3   : > { %v2486_v32 = vpop.f32.mrb[37].mxu1 }
 0x3f4   : > { %v2487_v33 = vadd.f32 %v2486_v32, %v2485_v31  ;;  %v2488_v34 = vpop.f32.mrb[38].mxu1 }
 0x3f5   : > { %v2489_v35 = vpop.f32.mrb[39].mxu1 }
 0x3f6   : > { %v2490_v36 = vadd.f32 %v2489_v35, %v2488_v34 }
 0x3f8   : > { %v1351_v37 = vpack.c.bf16 %v2490_v36, %v2487_v33 }
 0x3fa   : > { %2674 = vmatmul.mubr.bf16.vlgmr.msra.gmra.mrb[64].mxu0 %v1351_v37  ;;  %v2491_v38 = vpop.f32.mrb[40].mxu1 }
 0x3fb   : > { %v2492_v39 = vpop.f32.mrb[41].mxu1 }
 0x3fc   : > { %v2493_v40 = vadd.f32 %v2492_v39, %v2491_v38  ;;  %v2494_v41 = vpop.f32.mrb[42].mxu1 }
 0x3fd   : > { %v2495_v42 = vpop.f32.mrb[43].mxu1 }
 0x3fe   : > { %v2496_v44 = vadd.f32 %v2495_v42, %v2494_v41 }
 0x400   : > { %v1352_v45 = vpack.c.bf16 %v2496_v44, %v2493_v40 }
 0x402   : > { %v2497_v48 = vpop.f32.mrb[44].mxu1  ;;  %2677 = vmatprep.mubr.bf16.mxu0 %v1352_v45 }
 0x403   : > { %v2498_v49 = vpop.f32.mrb[45].mxu1 }
 0x404   : > { %v2499_v51 = vadd.f32 %v2498_v49, %v2497_v48  ;;  %v2500_v52 = vpop.f32.mrb[46].mxu1 }
 0x405   : > { %v2501_v53 = vpop.f32.mrb[47].mxu1 }
 0x406   : > { %v2502_v54 = vadd.f32 %v2501_v53, %v2500_v52 }
 0x408   : > { %v1353_v55 = vpack.c.bf16 %v2502_v54, %v2499_v51 }
 0x40a   : > { %2678 = vmatmul.mubr.bf16.gmra.mrb[68].mxu0 %v1353_v55  ;;  %v2503_v0 = vpop.f32.mrb[48].mxu1 }
 0x40b   : > { %v2504_v1 = vpop.f32.mrb[49].mxu1 }
 0x40c   : > { %v2505_v9 = vadd.f32 %v2504_v1, %v2503_v0  ;;  %v2506_v10 = vpop.f32.mrb[50].mxu1 }
 0x40d   : > { %v2507_v12 = vpop.f32.mrb[51].mxu1 }
 0x40e   : > { %v2508_v13 = vadd.f32 %v2507_v12, %v2506_v10 }
 0x410   : > { %v1354_v14 = vpack.c.bf16 %v2508_v13, %v2505_v9 }
 0x412   : > { %v2509_v15 = vpop.f32.mrb[52].mxu1  ;;  %2681 = vmatprep.mubr.bf16.mxu0 %v1354_v14 }
 0x413   : > { %v2510_v16 = vpop.f32.mrb[53].mxu1 }
 0x414   : > { %v2511_v21 = vadd.f32 %v2510_v16, %v2509_v15  ;;  %v2512_v11 = vpop.f32.mrb[54].mxu1 }
 0x415   : > { %v2513_v25 = vpop.f32.mrb[55].mxu1 }
 0x416   : > { %v2514_v3 = vadd.f32 %v2513_v25, %v2512_v11 }
 0x418   : > { %v1355_v47 = vpack.c.bf16 %v2514_v3, %v2511_v21 }
 0x41a   : > { %2682 = vmatmul.mubr.bf16.gmra.mrb[72].mxu0 %v1355_v47  ;;  %v2515_v2 = vpop.f32.mrb[56].mxu1 }
 0x41b   : > { %v2516_v50 = vpop.f32.mrb[57].mxu1 }
 0x41c   : > { %v2517_v56 = vadd.f32 %v2516_v50, %v2515_v2  ;;  %v2518_v57 = vpop.f32.mrb[58].mxu1 }
 0x41d   : > { %v2519_v58 = vpop.f32.mrb[59].mxu1 }
 0x41e   : > { %v2520_v59 = vadd.f32 %v2519_v58, %v2518_v57 }
 0x420   : > { %v1356_v60 = vpack.c.bf16 %v2520_v59, %v2517_v56 }
 0x422   : > { %v2521_v61 = vpop.f32.mrb[60].mxu1  ;;  %2685 = vmatprep.mubr.bf16.mxu0 %v1356_v60  ;;  %v2893_v60 = vld [vmem:[#allocation10] sm:$0xff]  }
 0x423   : > { %v2522_v62 = vpop.f32.mrb[61].mxu1  ;;  %2705 = vmatprep.subr.bf16.mxu0 %v2893_v60 }
 0x424   : > { %v2523_v63 = vadd.f32 %v2522_v62, %v2521_v61  ;;  %v2524_v4 = vpop.f32.mrb[62].mxu1  ;;  %v2894_v61 = vld [vmem:[#allocation10 + $0x8] sm:$0xff]   ;;  %2706 = vmatpush3.bf16.msra.mxu0 %v2893_v60  ;;  %v2895_v62 = vld [vmem:[#allocation10 + $0x10] sm:$0xff]  }
 0x425   : > { %v2525_v5 = vpop.f32.mrb[63].mxu1  ;;  %2707 = vmatprep.subr.bf16.mxu0 %v2894_v61 }
 0x426   : > { %v2526_v23 = vadd.f32 %v2525_v5, %v2524_v4  ;;  %v2897_v4 = vld [vmem:[#allocation10 + $0x20] sm:$0xff]  }
 0x427   : > { %v3683_v5 = vld [vmem:[%s3810_s5] ss:$0 sm:$0xff] }
 0x428   : > { %v1357_v6 = vpack.c.bf16 %v2526_v23, %v2523_v63  ;;  %2708 = vmatpush3.bf16.msra.mxu0 %v2894_v61  ;;  %v2896_v63 = vld [vmem:[#allocation10 + $0x18] sm:$0xff]   ;;  %v2898_v23 = vld [vmem:[#allocation10 + $0x28] sm:$0xff]  }
 0x429   : > { %2709 = vmatprep.subr.bf16.mxu0 %v2895_v62 }
 0x42a   : > { %2686 = vmatmul.mubr.bf16.gmra.mrb[76].mxu0 %v1357_v6  ;;  %v2527_v22 = vpop.f32.mrb[64].mxu1 }
 0x42b   : > { %v2528_v46 = vpop.f32.mrb[65].mxu1 }
 0x42c   : > { %v2529_v43 = vadd.f32 %v2528_v46, %v2527_v22  ;;  %v2530_v8 = vpop.f32.mrb[66].mxu1  ;;  %2710 = vmatpush3.bf16.msra.mxu0 %v2895_v62 }
 0x42d   : > { %v2531_v7 = vpop.f32.mrb[67].mxu1  ;;  %2711 = vmatprep.subr.bf16.mxu0 %v2896_v63 }
 0x42e   : > { %v2532_v17 = vadd.f32 %v2531_v7, %v2530_v8 }
 0x430   : > { %v1358_v18 = vpack.c.bf16 %v2532_v17, %v2529_v43  ;;  %2712 = vmatpush3.bf16.msra.mxu0 %v2896_v63 }
 0x431   : > { %2713 = vmatprep.subr.bf16.mxu0 %v2897_v4 }
 0x432   : > { %v2533_v19 = vpop.f32.mrb[68].mxu1  ;;  %2689 = vmatprep.mubr.bf16.mxu0 %v1358_v18 }
 0x433   : > { %v2534_v20 = vpop.f32.mrb[69].mxu1 }
 0x434   : > { %v2535_v24 = vadd.f32 %v2534_v20, %v2533_v19  ;;  %v2536_v26 = vpop.f32.mrb[70].mxu1  ;;  %2714 = vmatpush3.bf16.msra.mxu0 %v2897_v4  ;;  %v2899_v19 = vld [vmem:[#allocation10 + $0x30] sm:$0xff]  }
 0x435   : > { %v2537_v27 = vpop.f32.mrb[71].mxu1  ;;  %2715 = vmatprep.subr.bf16.mxu0 %v2898_v23 }
 0x436   : > { %v2538_v28 = vadd.f32 %v2537_v27, %v2536_v26 }
 0x438   : > { %v1359_v29 = vpack.c.bf16 %v2538_v28, %v2535_v24  ;;  %2716 = vmatpush3.bf16.msra.mxu0 %v2898_v23 }
 0x439   : > { %2717 = vmatprep.subr.bf16.mxu0 %v2899_v19 }
 0x43a   : > { %2690 = vmatmul.mubr.bf16.gmra.mrb[80].mxu0 %v1359_v29  ;;  %v2539_v30 = vpop.f32.mrb[72].mxu1 }
 0x43b   : > { %v2540_v31 = vpop.f32.mrb[73].mxu1 }
 0x43c   : > { %v2541_v32 = vadd.f32 %v2540_v31, %v2539_v30  ;;  %v2542_v33 = vpop.f32.mrb[74].mxu1  ;;  %2718 = vmatpush3.bf16.msra.mxu0 %v2899_v19 }
 0x43d   : > { %v2543_v34 = vpop.f32.mrb[75].mxu1 }
 0x43e   : > { %v2544_v35 = vadd.f32 %v2543_v34, %v2542_v33 }
 0x440   : > { %v1360_v36 = vpack.c.bf16 %v2544_v35, %v2541_v32  ;;  %v2900_v32 = vld [vmem:[#allocation10 + $0x38] sm:$0xff]  }
 0x441   : > { %2719 = vmatprep.subr.bf16.mxu0 %v2900_v32 }
 0x442   : > { %v2545_v37 = vpop.f32.mrb[76].mxu1  ;;  %2693 = vmatprep.mubr.bf16.mxu0 %v1360_v36  ;;  %2720 = vmatpush3.bf16.msra.mxu0 %v2900_v32 }
 0x443   : > { %v2546_v38 = vpop.f32.mrb[77].mxu1 }
 0x444   : > { %v2547_v39 = vadd.f32 %v2546_v38, %v2545_v37  ;;  %v2548_v40 = vpop.f32.mrb[78].mxu1 }
 0x445   : > { %v2549_v41 = vpop.f32.mrb[79].mxu1 }
 0x446   : > { %v2550_v42 = vadd.f32 %v2549_v41, %v2548_v40 }
 0x448   : > { %v1361_v44 = vpack.c.bf16 %v2550_v42, %v2547_v39 }
 0x44a   : > { %2694 = vmatmul.mubr.bf16.gmra.mrb[84].mxu0 %v1361_v44  ;;  %v2551_v45 = vpop.f32.mrb[80].mxu1 }
 0x44b   : > { %v2552_v48 = vpop.f32.mrb[81].mxu1 }
 0x44c   : > { %v2553_v49 = vadd.f32 %v2552_v48, %v2551_v45  ;;  %v2554_v51 = vpop.f32.mrb[82].mxu1 }
 0x44d   : > { %v2555_v52 = vpop.f32.mrb[83].mxu1 }
 0x44e   : > { %v2556_v53 = vadd.f32 %v2555_v52, %v2554_v51 }
 0x450   : > { %v1362_v54 = vpack.c.bf16 %v2556_v53, %v2553_v49 }
 0x452   : > { %v2557_v55 = vpop.f32.mrb[84].mxu1  ;;  %2697 = vmatprep.mubr.bf16.mxu0 %v1362_v54 }
 0x453   : > { %v2558_v0 = vpop.f32.mrb[85].mxu1 }
 0x454   : > { %v2559_v1 = vadd.f32 %v2558_v0, %v2557_v55  ;;  %v2560_v9 = vpop.f32.mrb[86].mxu1 }
 0x455   : > { %v2561_v10 = vpop.f32.mrb[87].mxu1 }
 0x456   : > { %v2562_v12 = vadd.f32 %v2561_v10, %v2560_v9 }
 0x458   : > { %v1363_v13 = vpack.c.bf16 %v2562_v12, %v2559_v1 }
 0x45a   : > { %2698 = vmatmul.mubr.bf16.gmra.mrb[88].mxu0 %v1363_v13  ;;  %v2563_v14 = vpop.f32.mrb[88].mxu1 }
 0x45b   : > { %v2564_v15 = vpop.f32.mrb[89].mxu1 }
 0x45c   : > { %v2565_v16 = vadd.f32 %v2564_v15, %v2563_v14  ;;  %v2566_v21 = vpop.f32.mrb[90].mxu1 }
 0x45d   : > { %v2567_v11 = vpop.f32.mrb[91].mxu1 }
 0x45e   : > { %v2568_v25 = vadd.f32 %v2567_v11, %v2566_v21 }
 0x460   : > { %v1364_v3 = vpack.c.bf16 %v2568_v25, %v2565_v16 }
 0x462   : > { %v2569_v47 = vpop.f32.mrb[92].mxu1  ;;  %2701 = vmatprep.mubr.bf16.mxu0 %v1364_v3 }
 0x463   : > { %v2570_v2 = vpop.f32.mrb[93].mxu1 }
 0x464   : > { %v2571_v50 = vadd.f32 %v2570_v2, %v2569_v47  ;;  %v2572_v56 = vpop.f32.mrb[94].mxu1 }
 0x465   : > { %v2573_v57 = vpop.f32.mrb[95].mxu1 }
 0x466   : > { %v2574_v58 = vadd.f32 %v2573_v57, %v2572_v56 }
 0x468   : > { %v1365_v59 = vpack.c.bf16 %v2574_v58, %v2571_v50 }
 0x46a   : > { %2702 = vmatmul.mubr.bf16.gmra.mrb[92].mxu0 %v1365_v59 }
 0x4cd   : > { %v2675_v6 = vpop.f32.mrb[64].mxu0 }
 0x4ce   : > { %v1480_v22 = vadd.f32 %v2675_v6, %v3683_v5  ;;  %v1471_v46 = vpop.f32.mrb[65].mxu0 }
 0x4cf   : > { %v1472_v43 = vadd.f32 %v3683_v5, %v1471_v46  ;;  %v2676_v8 = vpop.f32.mrb[66].mxu0 }
 0x4d0   : > { %v1600_v7 = vmax.f32 %v1480_v22, 0.0  ;;  %v1483_v17 = vadd.f32 %v2676_v8, %v3683_v5  ;;  %v1474_v18 = vpop.f32.mrb[67].mxu0 }
 0x4d1   : > { %v1598_v20 = vmax.f32 %v1472_v43, 0.0  ;;  %v1475_v24 = vadd.f32 %v3683_v5, %v1474_v18 }
 0x4d2   : > { %v1642_v26 = vrot.slane %v1600_v7, 4  ;;  %v1601_v27 = vmax.f32 %v1483_v17, 0.0 }
 0x4d3   : > { %v1630_v28 = vrot.slane %v1598_v20, 4  ;;  %v1599_v29 = vmax.f32 %v1475_v24, 0.0 }
 0x4d4   : > { %v1643_v30 = vadd.f32 %v1642_v26, %v1600_v7  ;;  %v1648_v31 = vrot.slane %v1601_v27, 4 }
 0x4d5   : > { %v1631_v33 = vadd.f32 %v1630_v28, %v1598_v20  ;;  %v1636_v34 = vrot.slane %v1599_v29, 4 }
 0x4d6   : > { %v1644_v35 = vrot.slane %v1643_v30, 2  ;;  %v1649_v36 = vadd.f32 %v1648_v31, %v1601_v27 }
 0x4d7   : > { %v1632_v37 = vrot.slane %v1631_v33, 2  ;;  %v1637_v38 = vadd.f32 %v1636_v34, %v1599_v29 }
 0x4d8   : > { %v1645_v39 = vadd.f32 %v1644_v35, %v1643_v30  ;;  %v1650_v40 = vrot.slane %v1649_v36, 2 }
 0x4d9   : > { %v1633_v41 = vadd.f32 %v1632_v37, %v1631_v33  ;;  %v1638_v42 = vrot.slane %v1637_v38, 2 }
 0x4da   : > { %v1646_v44 = vrot.slane %v1645_v39, 1  ;;  %v1651_v45 = vadd.f32 %v1650_v40, %v1649_v36 }
 0x4db   : > { %v1634_v48 = vrot.slane %v1633_v41, 1  ;;  %v1639_v49 = vadd.f32 %v1638_v42, %v1637_v38 }
 0x4dc   : > { %v1647_v51 = vadd.f32 %v1646_v44, %v1645_v39  ;;  %v1652_v52 = vrot.slane %v1651_v45, 1 }
 0x4dd   : > { %v1635_v53 = vadd.f32 %v1634_v48, %v1633_v41  ;;  %v1640_v54 = vrot.slane %v1639_v49, 1  ;;  %v2679_v55 = vpop.f32.mrb[68].mxu0 }
 0x4de   : > { %v1653_v0 = vadd.f32 %v1652_v52, %v1651_v45  ;;  %v1496_v1 = vadd.f32 %v2679_v55, %v3683_v5  ;;  %v1487_v9 = vpop.f32.mrb[69].mxu0  ;;  %v1824_v15 = vpack.c.bf16 %v1647_v51, %v1647_v51 }
 0x4df   : > { %v1822_v10 = vpack.c.bf16 %v1635_v53, %v1635_v53  ;;  %v1641_v12 = vadd.f32 %v1640_v54, %v1639_v49  ;;  %v1488_v13 = vadd.f32 %v3683_v5, %v1487_v9  ;;  %v2680_v14 = vpop.f32.mrb[70].mxu0 }
 0x4e0   : > { %v1604_v16 = vmax.f32 %v1496_v1, 0.0  ;;  %v1499_v21 = vadd.f32 %v2680_v14, %v3683_v5  ;;  %v1490_v11 = vpop.f32.mrb[71].mxu0  ;;  %v1825_v25 = vpack.c.bf16 %v1653_v0, %v1653_v0  ;;  %v1911_v61 = vunpack.c.l.b16 %v1824_v15 }
 0x4e1   : > { %v1823_v3 = vpack.c.bf16 %v1641_v12, %v1641_v12  ;;  %v1602_v47 = vmax.f32 %v1488_v13, 0.0  ;;  %v1491_v2 = vadd.f32 %v3683_v5, %v1490_v11  ;;  %v1909_v57 = vunpack.c.l.b16 %v1822_v10 }
 0x4e2   : > { %v1666_v50 = vrot.slane %v1604_v16, 4  ;;  %v1605_v56 = vmax.f32 %v1499_v21, 0.0  ;;  %v1912_v4 = vunpack.c.l.b16 %v1825_v25 }
 0x4e3   : > { %v1910_v58 = vunpack.c.l.b16 %v1823_v3  ;;  %v1654_v59 = vrot.slane %v1602_v47, 4  ;;  %v1603_v60 = vmax.f32 %v1491_v2, 0.0 }
 0x4e4   : > { %v1667_v62 = vadd.f32 %v1666_v50, %v1604_v16  ;;  %v1672_v63 = vrot.slane %v1605_v56, 4 }
 0x4e5   : > { %v1942_v23 = vsel %vm1941_vm0, %v1910_v58, %v1909_v57  ;;  %v1655_v6 = vadd.f32 %v1654_v59, %v1602_v47  ;;  %v1660_v22 = vrot.slane %v1603_v60, 4 }
 0x4e6   : > { %v1944_v46 = vsel %vm1943_vm1, %v1911_v61, %v1942_v23  ;;  %v1668_v43 = vrot.slane %v1667_v62, 2  ;;  %v1673_v8 = vadd.f32 %v1672_v63, %v1605_v56 }
 0x4e7   : > { %v1656_v7 = vrot.slane %v1655_v6, 2  ;;  %v1661_v17 = vadd.f32 %v1660_v22, %v1603_v60  ;;  %v1946_v18 = vsel %vm1945_vm2, %v1912_v4, %v1944_v46 }
 0x4e8   : > { %v1669_v19 = vadd.f32 %v1668_v43, %v1667_v62  ;;  %v1674_v20 = vrot.slane %v1673_v8, 2 }
 0x4e9   : > { %v1657_v24 = vadd.f32 %v1656_v7, %v1655_v6  ;;  %v1662_v26 = vrot.slane %v1661_v17, 2 }
 0x4ea   : > { %v1670_v27 = vrot.slane %v1669_v19, 1  ;;  %v1675_v28 = vadd.f32 %v1674_v20, %v1673_v8 }
 0x4eb   : > { %v1658_v29 = vrot.slane %v1657_v24, 1  ;;  %v1663_v30 = vadd.f32 %v1662_v26, %v1661_v17 }
 0x4ec   : > { %v1671_v31 = vadd.f32 %v1670_v27, %v1669_v19  ;;  %v1676_v32 = vrot.slane %v1675_v28, 1 }
 0x4ed   : > { %v1659_v33 = vadd.f32 %v1658_v29, %v1657_v24  ;;  %v1664_v34 = vrot.slane %v1663_v30, 1  ;;  %v2683_v35 = vpop.f32.mrb[72].mxu0 }
 0x4ee   : > { %v1677_v36 = vadd.f32 %v1676_v32, %v1675_v28  ;;  %v1512_v37 = vadd.f32 %v2683_v35, %v3683_v5  ;;  %v1503_v38 = vpop.f32.mrb[73].mxu0  ;;  %v1828_v44 = vpack.c.bf16 %v1671_v31, %v1671_v31 }
 0x4ef   : > { %v1826_v39 = vpack.c.bf16 %v1659_v33, %v1659_v33  ;;  %v1665_v40 = vadd.f32 %v1664_v34, %v1663_v30  ;;  %v1504_v41 = vadd.f32 %v3683_v5, %v1503_v38  ;;  %v2684_v42 = vpop.f32.mrb[74].mxu0 }
 0x4f0   : > { %v1829_v45 = vpack.c.bf16 %v1677_v36, %v1677_v36  ;;  %v1608_v48 = vmax.f32 %v1512_v37, 0.0  ;;  %v1515_v49 = vadd.f32 %v2684_v42, %v3683_v5  ;;  %v1506_v51 = vpop.f32.mrb[75].mxu0  ;;  %v1915_v14 = vunpack.c.l.b16 %v1828_v44 }
 0x4f1   : > { %v1913_v52 = vunpack.c.l.b16 %v1826_v39  ;;  %v1827_v53 = vpack.c.bf16 %v1665_v40, %v1665_v40  ;;  %v1606_v54 = vmax.f32 %v1504_v41, 0.0  ;;  %v1507_v55 = vadd.f32 %v3683_v5, %v1506_v51 }
 0x4f2   : > { %v1690_v0 = vrot.slane %v1608_v48, 4  ;;  %v1609_v1 = vmax.f32 %v1515_v49, 0.0  ;;  %v1916_v21 = vunpack.c.l.b16 %v1829_v45 }
 0x4f3   : > { %v1914_v9 = vunpack.c.l.b16 %v1827_v53  ;;  %v1678_v10 = vrot.slane %v1606_v54, 4  ;;  %v1607_v12 = vmax.f32 %v1507_v55, 0.0  ;;  %v1948_v13 = vsel %vm1947_vm3, %v1913_v52, %v1946_v18 }
 0x4f4   : > { %v1691_v15 = vadd.f32 %v1690_v0, %v1608_v48  ;;  %v1696_v16 = vrot.slane %v1609_v1, 4 }
 0x4f5   : > { %v1679_v11 = vadd.f32 %v1678_v10, %v1606_v54  ;;  %v1684_v25 = vrot.slane %v1607_v12, 4  ;;  %v1950_v3 = vsel %vm1949_vm4, %v1914_v9, %v1948_v13 }
 0x4f6   : > { %v1692_v47 = vrot.slane %v1691_v15, 2  ;;  %v1697_v2 = vadd.f32 %v1696_v16, %v1609_v1  ;;  %v1952_v50 = vsel %vm1951_vm5, %v1915_v14, %v1950_v3 }
 0x4f7   : > { %v1680_v56 = vrot.slane %v1679_v11, 2  ;;  %v1685_v57 = vadd.f32 %v1684_v25, %v1607_v12  ;;  %v3704_v58 = vsel %vm1953_vm6, %v1916_v21, %v1952_v50 }
 0x4f8   : > { %v1693_v59 = vadd.f32 %v1692_v47, %v1691_v15  ;;  %v1698_v60 = vrot.slane %v1697_v2, 2 }
 0x4f9   : > { %v1681_v61 = vadd.f32 %v1680_v56, %v1679_v11  ;;  %v1686_v62 = vrot.slane %v1685_v57, 2 }
 0x4fa   : > { %v1694_v63 = vrot.slane %v1693_v59, 1  ;;  %v1699_v4 = vadd.f32 %v1698_v60, %v1697_v2 }
 0x4fb   : > { %v1682_v23 = vrot.slane %v1681_v61, 1  ;;  %v1687_v6 = vadd.f32 %v1686_v62, %v1685_v57 }
 0x4fc   : > { %v1695_v22 = vadd.f32 %v1694_v63, %v1693_v59  ;;  %v1700_v46 = vrot.slane %v1699_v4, 1 }
 0x4fd   : > { %v1683_v43 = vadd.f32 %v1682_v23, %v1681_v61  ;;  %v1688_v8 = vrot.slane %v1687_v6, 1  ;;  %v2687_v7 = vpop.f32.mrb[76].mxu0 }
 0x4fe   : > { %v1701_v17 = vadd.f32 %v1700_v46, %v1699_v4  ;;  %v1528_v18 = vadd.f32 %v2687_v7, %v3683_v5  ;;  %v1519_v19 = vpop.f32.mrb[77].mxu0  ;;  %v1832_v28 = vpack.c.bf16 %v1695_v22, %v1695_v22 }
 0x4ff   : > { %v1830_v20 = vpack.c.bf16 %v1683_v43, %v1683_v43  ;;  %v1689_v24 = vadd.f32 %v1688_v8, %v1687_v6  ;;  %v1520_v26 = vadd.f32 %v3683_v5, %v1519_v19  ;;  %v2688_v27 = vpop.f32.mrb[78].mxu0 }
 0x500   : > { %v1612_v29 = vmax.f32 %v1528_v18, 0.0  ;;  %v1531_v30 = vadd.f32 %v2688_v27, %v3683_v5  ;;  %v1522_v31 = vpop.f32.mrb[79].mxu0  ;;  %v1833_v32 = vpack.c.bf16 %v1701_v17, %v1701_v17  ;;  %v1919_v42 = vunpack.c.l.b16 %v1832_v28 }
 0x501   : > { %v1831_v33 = vpack.c.bf16 %v1689_v24, %v1689_v24  ;;  %v1610_v34 = vmax.f32 %v1520_v26, 0.0  ;;  %v1523_v35 = vadd.f32 %v3683_v5, %v1522_v31  ;;  %v1917_v38 = vunpack.c.l.b16 %v1830_v20 }
 0x502   : > { %v1714_v36 = vrot.slane %v1612_v29, 4  ;;  %v1613_v37 = vmax.f32 %v1531_v30, 0.0  ;;  %v1920_v48 = vunpack.c.l.b16 %v1833_v32 }
 0x503   : > { %v1918_v39 = vunpack.c.l.b16 %v1831_v33  ;;  %v1702_v40 = vrot.slane %v1610_v34, 4  ;;  %v1611_v41 = vmax.f32 %v1523_v35, 0.0 }
 0x504   : > { %v1715_v44 = vadd.f32 %v1714_v36, %v1612_v29  ;;  %v1720_v45 = vrot.slane %v1613_v37, 4 }
 0x505   : > { %v1955_v49 = vsel %vm1941_vm0, %v1918_v39, %v1917_v38  ;;  %v1703_v51 = vadd.f32 %v1702_v40, %v1610_v34  ;;  %v1708_v52 = vrot.slane %v1611_v41, 4 }
 0x506   : > { %v1956_v53 = vsel %vm1943_vm1, %v1919_v42, %v1955_v49  ;;  %v1716_v54 = vrot.slane %v1715_v44, 2  ;;  %v1721_v55 = vadd.f32 %v1720_v45, %v1613_v37 }
 0x507   : > { %v1704_v0 = vrot.slane %v1703_v51, 2  ;;  %v1709_v1 = vadd.f32 %v1708_v52, %v1611_v41  ;;  %v1957_v9 = vsel %vm1945_vm2, %v1920_v48, %v1956_v53 }
 0x508   : > { %v1717_v10 = vadd.f32 %v1716_v54, %v1715_v44  ;;  %v1722_v12 = vrot.slane %v1721_v55, 2 }
 0x509   : > { %v1705_v13 = vadd.f32 %v1704_v0, %v1703_v51  ;;  %v1710_v14 = vrot.slane %v1709_v1, 2 }
 0x50a   : > { %v1718_v15 = vrot.slane %v1717_v10, 1  ;;  %v1723_v16 = vadd.f32 %v1722_v12, %v1721_v55 }
 0x50b   : > { %v1706_v21 = vrot.slane %v1705_v13, 1  ;;  %v1711_v11 = vadd.f32 %v1710_v14, %v1709_v1 }
 0x50c   : > { %v1719_v25 = vadd.f32 %v1718_v15, %v1717_v10  ;;  %v1724_v3 = vrot.slane %v1723_v16, 1 }
 0x50d   : > { %v1707_v47 = vadd.f32 %v1706_v21, %v1705_v13  ;;  %v1712_v2 = vrot.slane %v1711_v11, 1  ;;  %v2691_v50 = vpop.f32.mrb[80].mxu0 }
 0x50e   : > { %v1725_v56 = vadd.f32 %v1724_v3, %v1723_v16  ;;  %v1544_v57 = vadd.f32 %v2691_v50, %v3683_v5  ;;  %v1535_v59 = vpop.f32.mrb[81].mxu0  ;;  %v1836_v4 = vpack.c.bf16 %v1719_v25, %v1719_v25 }
 0x50f   : > { %v1834_v60 = vpack.c.bf16 %v1707_v47, %v1707_v47  ;;  %v1713_v61 = vadd.f32 %v1712_v2, %v1711_v11  ;;  %v1536_v62 = vadd.f32 %v3683_v5, %v1535_v59  ;;  %v2692_v63 = vpop.f32.mrb[82].mxu0 }
 0x510   : > { %v1837_v23 = vpack.c.bf16 %v1725_v56, %v1725_v56  ;;  %v1616_v6 = vmax.f32 %v1544_v57, 0.0  ;;  %v1547_v22 = vadd.f32 %v2692_v63, %v3683_v5  ;;  %v1538_v46 = vpop.f32.mrb[83].mxu0  ;;  %v1923_v28 = vunpack.c.l.b16 %v1836_v4 }
 0x511   : > { %v1921_v43 = vunpack.c.l.b16 %v1834_v60  ;;  %v1835_v8 = vpack.c.bf16 %v1713_v61, %v1713_v61  ;;  %v1614_v7 = vmax.f32 %v1536_v62, 0.0  ;;  %v1539_v17 = vadd.f32 %v3683_v5, %v1538_v46 }
 0x512   : > { %v1738_v18 = vrot.slane %v1616_v6, 4  ;;  %v1617_v19 = vmax.f32 %v1547_v22, 0.0  ;;  %v1924_v31 = vunpack.c.l.b16 %v1837_v23 }
 0x513   : > { %v1922_v20 = vunpack.c.l.b16 %v1835_v8  ;;  %v1726_v24 = vrot.slane %v1614_v7, 4  ;;  %v1615_v26 = vmax.f32 %v1539_v17, 0.0  ;;  %v1958_v27 = vsel %vm1947_vm3, %v1921_v43, %v1957_v9 }
 0x514   : > { %v1739_v29 = vadd.f32 %v1738_v18, %v1616_v6  ;;  %v1744_v30 = vrot.slane %v1617_v19, 4 }
 0x515   : > { %v1727_v32 = vadd.f32 %v1726_v24, %v1614_v7  ;;  %v1732_v33 = vrot.slane %v1615_v26, 4  ;;  %v1959_v34 = vsel %vm1949_vm4, %v1922_v20, %v1958_v27 }
 0x516   : > { %v1740_v35 = vrot.slane %v1739_v29, 2  ;;  %v1745_v36 = vadd.f32 %v1744_v30, %v1617_v19  ;;  %v1960_v37 = vsel %vm1951_vm5, %v1923_v28, %v1959_v34 }
 0x517   : > { %v1728_v38 = vrot.slane %v1727_v32, 2  ;;  %v1733_v39 = vadd.f32 %v1732_v33, %v1615_v26  ;;  %v1961_v40 = vsel %vm1953_vm6, %v1924_v31, %v1960_v37 }
 0x518   : > { %v1741_v41 = vadd.f32 %v1740_v35, %v1739_v29  ;;  %v1746_v42 = vrot.slane %v1745_v36, 2  ;;  %v1976_v44 = vpack.c.b16 %v1961_v40, %v3704_v58 }
 0x519   : > { %v1729_v45 = vadd.f32 %v1728_v38, %v1727_v32  ;;  %v1734_v48 = vrot.slane %v1733_v39, 2 }
 0x51a   : > { %v1742_v49 = vrot.slane %v1741_v41, 1  ;;  %v1747_v51 = vadd.f32 %v1746_v42, %v1745_v36  ;;  %2721 = vmatprep.mubr.bf16.mxu0 %v1976_v44 }
 0x51b   : > { %v1730_v52 = vrot.slane %v1729_v45, 1  ;;  %v1735_v53 = vadd.f32 %v1734_v48, %v1733_v39 }
 0x51c   : > { %v1743_v54 = vadd.f32 %v1742_v49, %v1741_v41  ;;  %v1748_v55 = vrot.slane %v1747_v51, 1 }
 0x51d   : > { %v1731_v0 = vadd.f32 %v1730_v52, %v1729_v45  ;;  %v1736_v1 = vrot.slane %v1735_v53, 1  ;;  %v2695_v9 = vpop.f32.mrb[84].mxu0 }
 0x51e   : > { %v1749_v10 = vadd.f32 %v1748_v55, %v1747_v51  ;;  %v1560_v12 = vadd.f32 %v2695_v9, %v3683_v5  ;;  %v1551_v13 = vpop.f32.mrb[85].mxu0  ;;  %v1840_v21 = vpack.c.bf16 %v1743_v54, %v1743_v54 }
 0x51f   : > { %v1838_v14 = vpack.c.bf16 %v1731_v0, %v1731_v0  ;;  %v1737_v15 = vadd.f32 %v1736_v1, %v1735_v53  ;;  %v1552_v58 = vadd.f32 %v3683_v5, %v1551_v13  ;;  %v2696_v16 = vpop.f32.mrb[86].mxu0 }
 0x520   : > { %v1620_v11 = vmax.f32 %v1560_v12, 0.0  ;;  %v1563_v25 = vadd.f32 %v2696_v16, %v3683_v5  ;;  %v1554_v3 = vpop.f32.mrb[87].mxu0  ;;  %v1841_v47 = vpack.c.bf16 %v1749_v10, %v1749_v10  ;;  %v1927_v4 = vunpack.c.l.b16 %v1840_v21 }
 0x521   : > { %v1839_v2 = vpack.c.bf16 %v1737_v15, %v1737_v15  ;;  %v1618_v50 = vmax.f32 %v1552_v58, 0.0  ;;  %v1555_v56 = vadd.f32 %v3683_v5, %v1554_v3  ;;  %v1925_v60 = vunpack.c.l.b16 %v1838_v14 }
 0x522   : > { %v1762_v57 = vrot.slane %v1620_v11, 4  ;;  %v1621_v59 = vmax.f32 %v1563_v25, 0.0  ;;  %v1928_v22 = vunpack.c.l.b16 %v1841_v47 }
 0x523   : > { %v1926_v61 = vunpack.c.l.b16 %v1839_v2  ;;  %v1750_v62 = vrot.slane %v1618_v50, 4  ;;  %v1619_v63 = vmax.f32 %v1555_v56, 0.0 }
 0x524   : > { %v1763_v23 = vadd.f32 %v1762_v57, %v1620_v11  ;;  %v1768_v6 = vrot.slane %v1621_v59, 4 }
 0x525   : > { %v1962_v46 = vsel %vm1941_vm0, %v1926_v61, %v1925_v60  ;;  %v1751_v43 = vadd.f32 %v1750_v62, %v1618_v50  ;;  %v1756_v8 = vrot.slane %v1619_v63, 4 }
 0x526   : > { %v1963_v7 = vsel %vm1943_vm1, %v1927_v4, %v1962_v46  ;;  %v1764_v17 = vrot.slane %v1763_v23, 2  ;;  %v1769_v18 = vadd.f32 %v1768_v6, %v1621_v59 }
 0x527   : > { %v1752_v19 = vrot.slane %v1751_v43, 2  ;;  %v1964_v20 = vsel %vm1945_vm2, %v1928_v22, %v1963_v7  ;;  %v1757_v24 = vadd.f32 %v1756_v8, %v1619_v63 }
 0x528   : > { %v1765_v26 = vadd.f32 %v1764_v17, %v1763_v23  ;;  %v1770_v27 = vrot.slane %v1769_v18, 2 }
 0x529   : > { %v1753_v28 = vadd.f32 %v1752_v19, %v1751_v43  ;;  %v1758_v29 = vrot.slane %v1757_v24, 2 }
 0x52a   : > { %v1766_v30 = vrot.slane %v1765_v26, 1  ;;  %v1771_v31 = vadd.f32 %v1770_v27, %v1769_v18 }
 0x52b   : > { %v1754_v32 = vrot.slane %v1753_v28, 1  ;;  %v1759_v33 = vadd.f32 %v1758_v29, %v1757_v24 }
 0x52c   : > { %v1767_v34 = vadd.f32 %v1766_v30, %v1765_v26  ;;  %v1772_v35 = vrot.slane %v1771_v31, 1 }
 0x52d   : > { %v1755_v36 = vadd.f32 %v1754_v32, %v1753_v28  ;;  %v1760_v37 = vrot.slane %v1759_v33, 1  ;;  %v2699_v38 = vpop.f32.mrb[88].mxu0 }
 0x52e   : > { %v1773_v39 = vadd.f32 %v1772_v35, %v1771_v31  ;;  %v1576_v40 = vadd.f32 %v2699_v38, %v3683_v5  ;;  %v1567_v41 = vpop.f32.mrb[89].mxu0  ;;  %v1844_v49 = vpack.c.bf16 %v1767_v34, %v1767_v34 }
 0x52f   : > { %v1842_v42 = vpack.c.bf16 %v1755_v36, %v1755_v36  ;;  %v1761_v44 = vadd.f32 %v1760_v37, %v1759_v33  ;;  %v1568_v45 = vadd.f32 %v3683_v5, %v1567_v41  ;;  %v2700_v48 = vpop.f32.mrb[90].mxu0 }
 0x530   : > { %v1845_v51 = vpack.c.bf16 %v1773_v39, %v1773_v39  ;;  %v1624_v52 = vmax.f32 %v1576_v40, 0.0  ;;  %v1579_v53 = vadd.f32 %v2700_v48, %v3683_v5  ;;  %v1570_v54 = vpop.f32.mrb[91].mxu0  ;;  %v1931_v16 = vunpack.c.l.b16 %v1844_v49 }
 0x531   : > { %v1929_v55 = vunpack.c.l.b16 %v1842_v42  ;;  %v1843_v0 = vpack.c.bf16 %v1761_v44, %v1761_v44  ;;  %v1622_v1 = vmax.f32 %v1568_v45, 0.0  ;;  %v1571_v9 = vadd.f32 %v3683_v5, %v1570_v54 }
 0x532   : > { %v1786_v10 = vrot.slane %v1624_v52, 4  ;;  %v1625_v12 = vmax.f32 %v1579_v53, 0.0  ;;  %v1932_v25 = vunpack.c.l.b16 %v1845_v51 }
 0x533   : > { %v1965_v13 = vsel %vm1947_vm3, %v1929_v55, %v1964_v20  ;;  %v1930_v14 = vunpack.c.l.b16 %v1843_v0  ;;  %v1774_v15 = vrot.slane %v1622_v1, 4  ;;  %v1623_v58 = vmax.f32 %v1571_v9, 0.0 }
 0x534   : > { %v1787_v21 = vadd.f32 %v1786_v10, %v1624_v52  ;;  %v1792_v11 = vrot.slane %v1625_v12, 4 }
 0x535   : > { %v1966_v3 = vsel %vm1949_vm4, %v1930_v14, %v1965_v13  ;;  %v1775_v47 = vadd.f32 %v1774_v15, %v1622_v1  ;;  %v1780_v2 = vrot.slane %v1623_v58, 4 }
 0x536   : > { %v1967_v50 = vsel %vm1951_vm5, %v1931_v16, %v1966_v3  ;;  %v1788_v56 = vrot.slane %v1787_v21, 2  ;;  %v1793_v57 = vadd.f32 %v1792_v11, %v1625_v12 }
 0x537   : > { %v1776_v59 = vrot.slane %v1775_v47, 2  ;;  %v1781_v60 = vadd.f32 %v1780_v2, %v1623_v58  ;;  %v3737_v61 = vsel %vm1953_vm6, %v1932_v25, %v1967_v50 }
 0x538   : > { %v1789_v62 = vadd.f32 %v1788_v56, %v1787_v21  ;;  %v1794_v63 = vrot.slane %v1793_v57, 2 }
 0x539   : > { %v1777_v4 = vadd.f32 %v1776_v59, %v1775_v47  ;;  %v1782_v23 = vrot.slane %v1781_v60, 2 }
 0x53a   : > { %v1790_v6 = vrot.slane %v1789_v62, 1  ;;  %v1795_v22 = vadd.f32 %v1794_v63, %v1793_v57 }
 0x53b   : > { %v1778_v46 = vrot.slane %v1777_v4, 1  ;;  %v1783_v43 = vadd.f32 %v1782_v23, %v1781_v60 }
 0x53c   : > { %v1791_v8 = vadd.f32 %v1790_v6, %v1789_v62  ;;  %v1796_v7 = vrot.slane %v1795_v22, 1 }
 0x53d   : > { %v1779_v17 = vadd.f32 %v1778_v46, %v1777_v4  ;;  %v1784_v18 = vrot.slane %v1783_v43, 1  ;;  %v2703_v19 = vpop.f32.mrb[92].mxu0 }
 0x53e   : > { %v1797_v20 = vadd.f32 %v1796_v7, %v1795_v22  ;;  %v1592_v24 = vadd.f32 %v2703_v19, %v3683_v5  ;;  %v1583_v26 = vpop.f32.mrb[93].mxu0  ;;  %v1848_v31 = vpack.c.bf16 %v1791_v8, %v1791_v8 }
 0x53f   : > { %v1846_v27 = vpack.c.bf16 %v1779_v17, %v1779_v17  ;;  %v1785_v28 = vadd.f32 %v1784_v18, %v1783_v43  ;;  %v1584_v29 = vadd.f32 %v3683_v5, %v1583_v26  ;;  %v2704_v30 = vpop.f32.mrb[94].mxu0  ;;  %v2309_v18 = vld [vmem:[%s3812_s7] ss:$0 sm:$0xff] }
 0x540   : > { %v1628_v32 = vmax.f32 %v1592_v24, 0.0  ;;  %v1595_v33 = vadd.f32 %v2704_v30, %v3683_v5  ;;  %v1586_v34 = vpop.f32.mrb[95].mxu0  ;;  %v1849_v35 = vpack.c.bf16 %v1797_v20, %v1797_v20  ;;  %v1935_v48 = vunpack.c.l.b16 %v1848_v31 }
 0x541   : > { %v1847_v36 = vpack.c.bf16 %v1785_v28, %v1785_v28  ;;  %v1626_v37 = vmax.f32 %v1584_v29, 0.0  ;;  %v1587_v38 = vadd.f32 %v3683_v5, %v1586_v34  ;;  %v1933_v41 = vunpack.c.l.b16 %v1846_v27 }
 0x542   : > { %v1810_v39 = vrot.slane %v1628_v32, 4  ;;  %v1629_v40 = vmax.f32 %v1595_v33, 0.0  ;;  %v1936_v52 = vunpack.c.l.b16 %v1849_v35 }
 0x543   : > { %v1934_v42 = vunpack.c.l.b16 %v1847_v36  ;;  %v1798_v44 = vrot.slane %v1626_v37, 4  ;;  %v1627_v45 = vmax.f32 %v1587_v38, 0.0 }
 0x544   : > { %v1811_v49 = vadd.f32 %v1810_v39, %v1628_v32  ;;  %v1816_v51 = vrot.slane %v1629_v40, 4 }
 0x545   : > { %v1969_v53 = vsel %vm1941_vm0, %v1934_v42, %v1933_v41  ;;  %v1799_v54 = vadd.f32 %v1798_v44, %v1626_v37  ;;  %v1804_v55 = vrot.slane %v1627_v45, 4 }
 0x546   : > { %v1970_v0 = vsel %vm1943_vm1, %v1935_v48, %v1969_v53  ;;  %v1812_v1 = vrot.slane %v1811_v49, 2  ;;  %v1817_v9 = vadd.f32 %v1816_v51, %v1629_v40 }
 0x547   : > { %v1800_v10 = vrot.slane %v1799_v54, 2  ;;  %v1971_v5 = vsel %vm1945_vm2, %v1936_v52, %v1970_v0  ;;  %v1805_v12 = vadd.f32 %v1804_v55, %v1627_v45 }
 0x548   : > { %v1813_v13 = vadd.f32 %v1812_v1, %v1811_v49  ;;  %v1818_v14 = vrot.slane %v1817_v9, 2 }
 0x549   : > { %v1801_v15 = vadd.f32 %v1800_v10, %v1799_v54  ;;  %v1806_v58 = vrot.slane %v1805_v12, 2 }
 0x54a   : > { %v1814_v16 = vrot.slane %v1813_v13, 1  ;;  %v1819_v21 = vadd.f32 %v1818_v14, %v1817_v9 }
 0x54b   : > { %v1802_v11 = vrot.slane %v1801_v15, 1  ;;  %v1807_v25 = vadd.f32 %v1806_v58, %v1805_v12 }
 0x54c   : > { %v1815_v3 = vadd.f32 %v1814_v16, %v1813_v13  ;;  %v1820_v47 = vrot.slane %v1819_v21, 1 }
 0x54d   : > { %v1803_v2 = vadd.f32 %v1802_v11, %v1801_v15  ;;  %v1808_v50 = vrot.slane %v1807_v25, 1 }
 0x54e   : > { %v1821_v56 = vadd.f32 %v1820_v47, %v1819_v21  ;;  %v1852_v60 = vpack.c.bf16 %v1815_v3, %v1815_v3 }
 0x54f   : > { %v1850_v57 = vpack.c.bf16 %v1803_v2, %v1803_v2  ;;  %v1809_v59 = vadd.f32 %v1808_v50, %v1807_v25 }
 0x550   : > { %v1853_v63 = vpack.c.bf16 %v1821_v56, %v1821_v56  ;;  %v1939_v22 = vunpack.c.l.b16 %v1852_v60 }
 0x551   : > { %v1937_v62 = vunpack.c.l.b16 %v1850_v57  ;;  %v1851_v4 = vpack.c.bf16 %v1809_v59, %v1809_v59 }
 0x552   : > { %v1940_v46 = vunpack.c.l.b16 %v1853_v63 }
 0x553   : > { %v1972_v23 = vsel %vm1947_vm3, %v1937_v62, %v1971_v5  ;;  %v1938_v6 = vunpack.c.l.b16 %v1851_v4 }
 0x555   : > { %v1973_v43 = vsel %vm1949_vm4, %v1938_v6, %v1972_v23 }
 0x556   : > { %v1974_v8 = vsel %vm1951_vm5, %v1939_v22, %v1973_v43 }
 0x557   : > { %v1975_v7 = vsel %vm1953_vm6, %v1940_v46, %v1974_v8 }
 0x558   : > { %v1977_v17 = vpack.c.b16 %v1975_v7, %v3737_v61 }
 0x55a   : > { %2722 = vmatmul.mubr.bf16.vlgmr.msra.gmra.mrb[96].mxu0 %v1977_v17 }
 0x62d   : > { %v2723_v19 = vpop.f32.mrb[96].mxu0 }
 0x62e   : > { %v2071_v20 = vadd.f32 %v2723_v19, %v2309_v18  ;;  %v2062_v24 = vpop.f32.mrb[97].mxu0 }
 0x62f   : > { %v2063_v26 = vadd.f32 %v2309_v18, %v2062_v24  ;;  %v2724_v27 = vpop.f32.mrb[98].mxu0 }
 0x630   : > { %v2079_v28 = vmax.f32 %v2071_v20, 0.0  ;;  %v2074_v29 = vadd.f32 %v2724_v27, %v2309_v18  ;;  %v2065_v30 = vpop.f32.mrb[99].mxu0 }
 0x631   : > { %v2077_v61 = vmax.f32 %v2063_v26, 0.0  ;;  %v2066_v31 = vadd.f32 %v2309_v18, %v2065_v30 }
 0x632   : > { %2083 = vst [vmem:[%s407_s10 + $0x10] sm:$0xff] %v2079_v28  ;;  %v2080_v32 = vmax.f32 %v2074_v29, 0.0 }
 0x633   : > { %2081 = vst [vmem:[%s407_s10] sm:$0xff] %v2077_v61  ;;  %v2078_v33 = vmax.f32 %v2066_v31, 0.0 }
 0x634   : > { %2084 = vst [vmem:[%s407_s10 + $0x18] sm:$0xff] %v2080_v32 }
 0x635   : > { %2082 = vst [vmem:[%s407_s10 + $0x8] sm:$0xff] %v2078_v33 }
 0x636   : > { %3058 = shalt.err (!%p3055_p3)
}
 0x637   : > { %s3059_s27 = scalar_lea.hbm %s3761_s24, 512  ;;  %s3063_s0 = scalar_lea.hbm %s3813_s8, 1024 }
 0x638   : > { %p3060_p9 = scmp.ne.s32.totalorder %s3761_s24, %s3059_s27  ;;  %p3064_p7 = scmp.lt.u32.totalorder %s3761_s24, %s3813_s8 }
 0x639   : > { %p3065_p12 = scmp.lt.u32.totalorder %s3063_s0, %s3059_s27  ;;  %p3067_p2 = scmp.lt.u32.totalorder %s3059_s27, %s3761_s24 }
 0x63a   : > { %p3061_p13 = pnand %p3060_p9, %p3336_p5 }
 0x63b   : > { %p3066_p1 = por %p3065_p12, %p3064_p7 }
 0x63c   : > { %p3062_p11 = pneg %p3061_p13 }
 0x63d   : > { %p3068_p4 = por %p3067_p2, %p3066_p1 }
 0x63f   : > { %p3069_p0 = pnand %p3068_p4, %p3062_p11 }
 0x641   : > { %3072 = shalt.err (!%p3069_p0)
}
 0x642   : > { %s3135_s16 = smov 128   ;;  %s3136_s12 = smov 8  }
 0x643   : > { %2741 = dma.vmem_to_hbm [thread:$0]  (%p3336_p5), %s3756_s15, 512, %s3761_s24, %s2086_s9, %s3135_s16, %s3135_s16, %s3136_s12  }
 0x644 PF: > { %s3847_s10 = sld [smem:[#allocation17_spill]]  ;;  %s3848_s6 = sld [smem:[#allocation18_spill]] }
 0x645   : > { %p3850_p6 = scmp.ge.s32.totalorder %s3123_s30, 2 }
 0x64a   : > { %s2114_s20 = sand.u32 1, %s3847_s10   ;;  %p3849_p8 = scmp.ne.s32.totalorder %s3848_s6, 0 }
 0x64b   : > { %s2115_s19 = scalar_lea.sflag [#allocation4], %s2114_s20 }
 0x64c   : > { %p2761_p10 = pnand %p3850_p6, %p3849_p8 }
 0x64e   : > { %3106 = dma.done.wait (!%p2761_p10), %s2115_s19, 512  }
 0x64f   : > { %3108 = vsyncadd (!%p2761_p10), %s2115_s19, 4294966784  ;;  %p25_p3 = scmp.ge.s32.totalorder %s3322_s26, 4   ;;  %s3851_s27 = smov %s3115_s28 }
 0x650   : > { %s3852_s28 = smov %s3119_s29  ;;  %s3853_s29 = smov %s3332_s22 }
 0x651   : > { %s3854_s30 = smov %s3322_s26  ;;  %27 = sbr.rel (!%p25_p3) target bundleno = 13 (0xd), region = 122 }
 0x658   :  { %2120 = vsyncpa [#allocation3], 1 }
 0x659   :  { %2122 = vsyncpa [#allocation3 + $0x1], 1 }
 0x65a   :  { %2123 = vsyncpa [#allocation6], 1 }
 0x65b   :  { %2125 = vsyncpa [#allocation6 + $0x1], 1 }
 0x65c   :  { %2126 = vsyncpa [#allocation9], 1 }
 0x65d   :  { %2127 = vsyncpa [#allocation4], 1 }
 0x65e   :  { %2129 = vsyncpa [#allocation4 + $0x1], 1 }

</bundles_post_ra>
